<compile_context>
chip_gen: v5e
topology: v5e:2x2
jax: 0.10.0
libtpu: 0.0.40
codegen_flags: <defaults>
</compile_context>

<pallas_src>
import functools

import numpy as np
import jax
import jax.numpy as jnp
from jax.experimental import pallas as pl
from jax.experimental.pallas import tpu as pltpu

EPS = 1e-5                       # torch.nn.LayerNorm default eps
_VMEM_LIMIT = 64 * 1024 * 1024   # explicit scoped-VMEM cap


# ---------------------------------------------------------------------------
# Shared math (used both inside kernels and in the pure-JAX reference)
# ---------------------------------------------------------------------------
def _ln_tanh(v, gamma, beta):
    mu = jnp.mean(v, axis=-1, keepdims=True)
    var = jnp.mean((v - mu) ** 2, axis=-1, keepdims=True)
    return jnp.tanh((v - mu) * jax.lax.rsqrt(var + EPS) * gamma + beta)


def _log_softmax(x):
    m = jnp.max(x, axis=-1, keepdims=True)
    return x - (jnp.log(jnp.sum(jnp.exp(x - m), axis=-1, keepdims=True)) + m)


def breadth2inorder(depth):
    factor = np.array([-0.5, 0.5])
    start = np.array([0.0])
    ranks = [start]
    for _ in range(depth):
        level_ranks = ranks[-1][:, None] + factor
        factor = factor / 2
        ranks.append(level_ranks.reshape(-1))
    ranks = np.concatenate(ranks)
    return np.argsort(ranks)


def _row_tile(rows):
    """Largest clean row tile (last-two-dims rule: multiple of 8 or full)."""
    for t in (512, 256, 128):
        if rows % t == 0:
            return t
    return rows


# ---------------------------------------------------------------------------
# Pallas kernels
# ---------------------------------------------------------------------------
def _init_parent_kernel(enc_ref, wi_ref, bi_ref, g_ref, bt_ref,
                        wlh_ref, wlc_ref, bl_ref, h0_ref, ll0_ref,
                        *, mxu_dtype):
    # Operator.init_parent: in_transform (Linear + LayerNorm + Tanh) then
    # leaf_transform on cat(hidden, context=encoded) + log_softmax.
    enc = enc_ref[...]                                              # (B, H)
    z = jnp.dot(enc.astype(mxu_dtype), wi_ref[...],
                preferred_element_type=jnp.float32) + bi_ref[...]   # (B, H)
    h0 = _ln_tanh(z, g_ref[...], bt_ref[...])
    h0_ref[...] = h0
    lg = (jnp.dot(h0.astype(mxu_dtype), wlh_ref[...],
                  preferred_element_type=jnp.float32)
          + jnp.dot(enc.astype(mxu_dtype), wlc_ref[...],
                    preferred_element_type=jnp.float32)
          + bl_ref[...])                                            # (B, 2)
    ll0_ref[...] = _log_softmax(lg)


def _expand_compute(h, c, llp, wh, wc, bc, gamma, beta, wl, bl, H, mxu_dtype):
    """One row-tile of parents -> both child branches + leaf log-probs."""
    # Fused cell matmul: (rows, H) @ (H, 2H); only level 1 has a real context.
    z = jnp.dot(h.astype(mxu_dtype), wh, preferred_element_type=jnp.float32)
    if c is not None:
        z = z + jnp.dot(c.astype(mxu_dtype), wc,
                        preferred_element_type=jnp.float32)
    z = z + bc                                                      # (rows,2H)
    b0 = _ln_tanh(z[:, :H], gamma, beta)                            # left
    b1 = _ln_tanh(z[:, H:], gamma, beta)                            # right
    # leaf_transform(cat(branch, context)); child context is exactly zero
    # (attention disabled) so only the hidden half of W_leaf matters.
    lg0 = jnp.dot(b0.astype(mxu_dtype), wl,
                  preferred_element_type=jnp.float32) + bl          # (rows,2)
    lg1 = jnp.dot(b1.astype(mxu_dtype), wl,
                  preferred_element_type=jnp.float32) + bl
    keep = 0.5 * llp[:, 1:2]                                        # update_logbreak
    return (jnp.concatenate([b0, b1], axis=-1),                     # (rows,2H)
            jnp.concatenate([keep + _log_softmax(lg0),
                             keep + _log_softmax(lg1)], axis=-1))   # (rows,4)


def _expand_ctx_kernel(h_ref, c_ref, llp_ref, wh_ref, wc_ref, bc_ref,
                       g_ref, bt_ref, wl_ref, bl_ref, br_ref, ll_ref,
                       *, H, mxu_dtype):
    br, ll = _expand_compute(h_ref[...], c_ref[...], llp_ref[...],
                             wh_ref[...], wc_ref[...], bc_ref[...],
                             g_ref[...], bt_ref[...], wl_ref[...], bl_ref[...],
                             H, mxu_dtype)
    br_ref[...] = br
    ll_ref[...] = ll


def _expand_noctx_kernel(h_ref, llp_ref, wh_ref, bc_ref,
                         g_ref, bt_ref, wl_ref, bl_ref, br_ref, ll_ref,
                         *, H, mxu_dtype):
    br, ll = _expand_compute(h_ref[...], None, llp_ref[...],
                             wh_ref[...], None, bc_ref[...],
                             g_ref[...], bt_ref[...], wl_ref[...], bl_ref[...],
                             H, mxu_dtype)
    br_ref[...] = br
    ll_ref[...] = ll


def _output_kernel(h_ref, lv_ref, w_ref, o_ref, *, V, mxu_dtype):
    # output_transform (no output attention): log_softmax(hidden @ W_out.T)
    # plus the break log-prob of the node. Vocab is padded to a lane-dense
    # multiple of 128; padded lanes are masked out of the softmax.
    logits = jnp.dot(h_ref[...].astype(mxu_dtype), w_ref[...],
                     preferred_element_type=jnp.float32)            # (tm,Vp)
    col = jax.lax.broadcasted_iota(jnp.int32, logits.shape, 1)
    logits = jnp.where(col < V, logits, jnp.float32(-1e30))
    o_ref[...] = _log_softmax(logits) + lv_ref[...][:, 0:1]


# ---------------------------------------------------------------------------
# pallas_call wrappers
# ---------------------------------------------------------------------------
def _expand_level(h_rows, ctx_rows, ll_rows, W_h, W_c, b_c, g2, bt2, Wlh, bl2,
                  H, mxu_dtype):
    rows = h_rows.shape[0]
    tm = _row_tile(rows)
    grid = (rows // tm,)
    with_context = ctx_rows is not None

    data_spec = pl.BlockSpec((tm, H), lambda i: (i, 0))
    ll_spec = pl.BlockSpec((tm, 2), lambda i: (i, 0))
    w2h_spec = pl.BlockSpec((H, 2 * H), lambda i: (0, 0))
    row_2h = pl.BlockSpec((1, 2 * H), lambda i: (0, 0))
    row_h = pl.BlockSpec((1, H), lambda i: (0, 0))
    wl_spec = pl.BlockSpec((H, 2), lambda i: (0, 0))
    bl_spec = pl.BlockSpec((1, 2), lambda i: (0, 0))

    if with_context:
        kernel = functools.partial(_expand_ctx_kernel, H=H, mxu_dtype=mxu_dtype)
        in_specs = [data_spec, data_spec, ll_spec, w2h_spec, w2h_spec, row_2h,
                    row_h, row_h, wl_spec, bl_spec]
        args = (h_rows, ctx_rows, ll_rows, W_h, W_c, b_c, g2, bt2, Wlh, bl2)
    else:
        kernel = functools.partial(_expand_noctx_kernel, H=H,
                                   mxu_dtype=mxu_dtype)
        in_specs = [data_spec, ll_spec, w2h_spec, row_2h,
                    row_h, row_h, wl_spec, bl_spec]
        args = (h_rows, ll_rows, W_h, b_c, g2, bt2, Wlh, bl2)

    n_ops = 2 if with_context else 1
    flops = 2 * rows * H * 2 * H * n_ops + 2 * (2 * rows) * H * 2
    trans = rows * (2 * H + 4)
    bytes_acc = 4 * (rows * (H * n_ops + 2 + 2 * H + 4)
                     + n_ops * H * 2 * H + 6 * H + 2 * H + 2)

    return pl.pallas_call(
        kernel,
        out_shape=(jax.ShapeDtypeStruct((rows, 2 * H), jnp.float32),
                   jax.ShapeDtypeStruct((rows, 4), jnp.float32)),
        grid=grid,
        in_specs=in_specs,
        out_specs=(pl.BlockSpec((tm, 2 * H), lambda i: (i, 0)),
                   pl.BlockSpec((tm, 4), lambda i: (i, 0))),
        compiler_params=pltpu.CompilerParams(
            dimension_semantics=("parallel",),
            vmem_limit_bytes=_VMEM_LIMIT),
        cost_estimate=pl.CostEstimate(flops=flops, transcendentals=trans,
                                      bytes_accessed=bytes_acc),
    )(*args)


def _output_transform(h_rows, lv_rows, W_out_T_pad, V, mxu_dtype):
    M, H = h_rows.shape
    V_pad = W_out_T_pad.shape[1]
    tm = _row_tile(M)
    grid = (M // tm,)
    kernel = functools.partial(_output_kernel, V=V, mxu_dtype=mxu_dtype)
    return pl.pallas_call(
        kernel,
        out_shape=jax.ShapeDtypeStruct((M, V_pad), jnp.float32),
        grid=grid,
        in_specs=[pl.BlockSpec((tm, H), lambda i: (i, 0)),
                  pl.BlockSpec((tm, 2), lambda i: (i, 0)),
                  pl.BlockSpec((H, V_pad), lambda i: (0, 0))],
        out_specs=pl.BlockSpec((tm, V_pad), lambda i: (i, 0)),
        compiler_params=pltpu.CompilerParams(
            dimension_semantics=("parallel",),
            vmem_limit_bytes=_VMEM_LIMIT),
        cost_estimate=pl.CostEstimate(
            flops=2 * M * H * V_pad,
            transcendentals=M * V_pad,
            bytes_accessed=4 * (M * (H + 2 + V_pad) + H * V_pad)),
    )(h_rows, lv_rows, W_out_T_pad)


# ---------------------------------------------------------------------------
# Parameter init + full forward
# ---------------------------------------------------------------------------
def init_params(key, H, V, scale=0.1):
    ks = jax.random.split(key, 6)
    # NOTE: the PyTorch module zero-inits leaf/output weights; small random
    # values are used here so the synthetic kernel output is non-trivial.
    return dict(
        W_in=jax.random.normal(ks[0], (H, H), jnp.float32) * scale,
        b_in=jax.random.normal(ks[1], (H,), jnp.float32) * scale,
        gamma=jnp.ones((H,), jnp.float32),            # torch LayerNorm default
        beta=jnp.zeros((H,), jnp.float32),
        W_cell=jax.random.normal(ks[2], (2 * H, 2 * H), jnp.float32) * scale,
        b_cell=jax.random.normal(ks[3], (2 * H,), jnp.float32) * scale,
        W_leaf=jax.random.normal(ks[4], (2, 2 * H), jnp.float32) * scale,
        b_leaf=jnp.zeros((2,), jnp.float32),
        W_out=jax.random.normal(ks[5], (V, H), jnp.float32) * scale,
    )


def ctree_decoder_forward(encoded, params, max_depth, mxu_dtype=jnp.float32):
    """Forward pass. Set mxu_dtype=jnp.bfloat16 on v6e/v7x for ~2x MXU rate
    (loosen the correctness tolerance accordingly)."""
    B, H = encoded.shape
    V = params["W_out"].shape[0]

    g2 = params["gamma"].reshape(1, H)
    bt2 = params["beta"].reshape(1, H)
    Wlh = params["W_leaf"][:, :H].T.astype(mxu_dtype)   # (H, 2) hidden half
    Wlc = params["W_leaf"][:, H:].T.astype(mxu_dtype)   # (H, 2) context half
    bl2 = params["b_leaf"].reshape(1, 2)

    # --- init_parent -------------------------------------------------------
    h0, ll0 = pl.pallas_call(
        functools.partial(_init_parent_kernel, mxu_dtype=mxu_dtype),
        out_shape=(jax.ShapeDtypeStruct((B, H), jnp.float32),
                   jax.ShapeDtypeStruct((B, 2), jnp.float32)),
        grid=(1,),
        in_specs=[
            pl.BlockSpec((B, H), lambda i: (0, 0)),
            pl.BlockSpec((H, H), lambda i: (0, 0)),
            pl.BlockSpec((1, H), lambda i: (0, 0)),
            pl.BlockSpec((1, H), lambda i: (0, 0)),
            pl.BlockSpec((1, H), lambda i: (0, 0)),
            pl.BlockSpec((H, 2), lambda i: (0, 0)),
            pl.BlockSpec((H, 2), lambda i: (0, 0)),
            pl.BlockSpec((1, 2), lambda i: (0, 0)),
        ],
        out_specs=(pl.BlockSpec((B, H), lambda i: (0, 0)),
                   pl.BlockSpec((B, 2), lambda i: (0, 0))),
        compiler_params=pltpu.CompilerParams(vmem_limit_bytes=_VMEM_LIMIT),
    )(encoded, params["W_in"].T.astype(mxu_dtype), params["b_in"].reshape(1, H),
      g2, bt2, Wlh, Wlc, bl2)

    # Fused cell weights: columns [branch0 | branch1] per input half.
    W_h = params["W_cell"][:, :H].T.astype(mxu_dtype)   # (H, 2H) from hidden
    W_c = params["W_cell"][:, H:].T.astype(mxu_dtype)   # (H, 2H) from context
    b_c = params["b_cell"].reshape(1, 2 * H)

    hidden_levels = [h0[None]]          # list of (L, B, H)
    leaves_levels = [ll0[None]]         # list of (L, B, 2)
    h_rows = h0                         # (L*B, H) row-flattened parents
    ll_rows = ll0                       # (L*B, 2)

    # --- per-depth expansion (batched over all parents of the level) --------
    for d in range(max_depth):
        L = hidden_levels[-1].shape[0]
        ctx = encoded if d == 0 else None    # levels >= 2: context == 0 (skip)
        br, ll4 = _expand_level(h_rows, ctx, ll_rows,
                                W_h, W_c, b_c, g2, bt2, Wlh, bl2, H, mxu_dtype)
        # PyTorch: branches.permute(0,2,1,3).flatten(0,1) — layout plumbing
        # done in the wrapper so kernel stores stay lane-dense.
        child_h = br.reshape(L, B, 2, H).transpose(0, 2, 1, 3).reshape(2 * L, B, H)
        child_ll = ll4.reshape(L, B, 2, 2).transpose(0, 2, 1, 3).reshape(2 * L, B, 2)
        hidden_levels.append(child_h)
        leaves_levels.append(child_ll)
        h_rows = child_h.reshape(2 * L * B, H)
        ll_rows = child_ll.reshape(2 * L * B, 2)

    hiddens_all = jnp.concatenate(hidden_levels, axis=0)   # (N, B, H)
    leaves_all = jnp.concatenate(leaves_levels, axis=0)    # (N, B, 2)
    N = hiddens_all.shape[0]

    # --- output transform: wrapper-side in-order gather, one tiled matmul ---
    order = jnp.asarray(breadth2inorder(max_depth), dtype=jnp.int32)
    h_ord = hiddens_all[order].reshape(N * B, H)
    lv_ord = leaves_all[order].reshape(N * B, 2)

    V_pad = ((V + 127) // 128) * 128
    W_out_T = jnp.pad(params["W_out"].T, ((0, 0), (0, V_pad - V)))
    out = _output_transform(h_ord, lv_ord, W_out_T.astype(mxu_dtype),
                            V, mxu_dtype)
    return out[:, :V].reshape(N, B, V)


# ---------------------------------------------------------------------------
# Pure-JAX reference (mirrors the PyTorch forward semantics)
# ---------------------------------------------------------------------------
def ref_forward(encoded, params, max_depth):
    H = encoded.shape[-1]
    gamma, beta = params["gamma"], params["beta"]
    W_leaf, b_leaf = params["W_leaf"], params["b_leaf"]

    h0 = _ln_tanh(encoded @ params["W_in"].T + params["b_in"], gamma, beta)[None]
    c0 = encoded[None]
    ll0 = _log_softmax(jnp.concatenate([h0, c0], -1) @ W_leaf.T + b_leaf)

    hidden_levels, leaves_levels = [h0], [ll0]
    ph, pc, pll = h0, c0, ll0
    for _ in range(max_depth):
        L, B, _ = ph.shape
        z = jnp.concatenate([ph, pc], -1) @ params["W_cell"].T + params["b_cell"]
        branches = _ln_tanh(z.reshape(L, B, 2, H), gamma, beta)
        ctx = jnp.zeros_like(branches)
        ll = _log_softmax(jnp.concatenate([branches, ctx], -1) @ W_leaf.T + b_leaf)
        ll = 0.5 * pll[:, :, None, 1:] + ll          # update_logbreak
        ph = branches.transpose(0, 2, 1, 3).reshape(2 * L, B, H)
        pc = jnp.zeros_like(ph)
        pll = ll.transpose(0, 2, 1, 3).reshape(2 * L, B, 2)
        hidden_levels.append(ph)
        leaves_levels.append(pll)

    order = jnp.asarray(breadth2inorder(max_depth), dtype=jnp.int32)
    hall = jnp.concatenate(hidden_levels, 0)[order]
    lall = jnp.concatenate(leaves_levels, 0)[order]
    return _log_softmax(hall @ params["W_out"].T) + lall[:, :, :1]


# ---------------------------------------------------------------------------
if __name__ == "__main__":
    key = jax.random.PRNGKey(0)
    k_enc, k_par = jax.random.split(key)

    B, H, V, max_depth = 2, 32, 16, 3          # batch, slot_size, ntoken, depth
    encoded = jax.random.normal(k_enc, (B, H), jnp.float32)
    params = init_params(k_par, H, V)

    fwd = jax.jit(functools.partial(ctree_decoder_forward, max_depth=max_depth))
    out = jax.block_until_ready(fwd(encoded, params))

    N = 2 ** (max_depth + 1) - 1
    assert out.shape == (N, B, V), out.shape

    ref = jax.block_until_ready(ref_forward(encoded, params, max_depth))
    max_err = float(jnp.max(jnp.abs(out - ref)))
    assert jnp.allclose(out, ref, atol=1e-3, rtol=1e-3), max_err

    print("KERNEL_OK")
</pallas_src>

<mosaic_0001>
module attributes {stable_mosaic.version = 11 : i64} {
  func.func @_init_parent_kernel(%arg0: i32, %arg1: memref<2x32xf32, #tpu.memory_space<vmem>>, %arg2: memref<32x32xf32, #tpu.memory_space<vmem>>, %arg3: memref<1x32xf32, #tpu.memory_space<vmem>>, %arg4: memref<1x32xf32, #tpu.memory_space<vmem>>, %arg5: memref<1x32xf32, #tpu.memory_space<vmem>>, %arg6: memref<32x2xf32, #tpu.memory_space<vmem>>, %arg7: memref<32x2xf32, #tpu.memory_space<vmem>>, %arg8: memref<1x2xf32, #tpu.memory_space<vmem>>, %arg9: memref<2x32xf32, #tpu.memory_space<vmem>>, %arg10: memref<2x2xf32, #tpu.memory_space<vmem>>) attributes {dimension_semantics = [#tpu.dimension_semantics<arbitrary>], iteration_bounds = array<i64: 1>, scalar_prefetch = 0 : i64, scratch_operands = 0 : i64, tpu.core_type = #tpu.core_type<tc>, window_params = [{pipeline_mode = #tpu.pipeline_mode<synchronous>, transform_indices = @transform_0, window_bounds = array<i64: 2, 32>}, {pipeline_mode = #tpu.pipeline_mode<synchronous>, transform_indices = @transform_1, window_bounds = array<i64: 32, 32>}, {pipeline_mode = #tpu.pipeline_mode<synchronous>, transform_indices = @transform_2, window_bounds = array<i64: 1, 32>}, {pipeline_mode = #tpu.pipeline_mode<synchronous>, transform_indices = @transform_3, window_bounds = array<i64: 1, 32>}, {pipeline_mode = #tpu.pipeline_mode<synchronous>, transform_indices = @transform_4, window_bounds = array<i64: 1, 32>}, {pipeline_mode = #tpu.pipeline_mode<synchronous>, transform_indices = @transform_5, window_bounds = array<i64: 32, 2>}, {pipeline_mode = #tpu.pipeline_mode<synchronous>, transform_indices = @transform_6, window_bounds = array<i64: 32, 2>}, {pipeline_mode = #tpu.pipeline_mode<synchronous>, transform_indices = @transform_7, window_bounds = array<i64: 1, 2>}, {pipeline_mode = #tpu.pipeline_mode<synchronous>, transform_indices = @transform_8, window_bounds = array<i64: 2, 32>}, {pipeline_mode = #tpu.pipeline_mode<synchronous>, transform_indices = @transform_9, window_bounds = array<i64: 2, 2>}]} {
    %c0 = arith.constant 0 : index
    %c0_0 = arith.constant 0 : index
    %0 = vector.load %arg1[%c0, %c0_0] : memref<2x32xf32, #tpu.memory_space<vmem>>, vector<2x32xf32>
    %c0_1 = arith.constant 0 : index
    %c0_2 = arith.constant 0 : index
    %1 = vector.load %arg2[%c0_1, %c0_2] : memref<32x32xf32, #tpu.memory_space<vmem>>, vector<32x32xf32>
    %cst = arith.constant dense<0.000000e+00> : vector<2x32xf32>
    %2 = tpu.matmul %0, %1, %cst {dimension_numbers = #tpu.dot_dimension_numbers<[1], [0], [0], [1], [0, 0, 1, 1], [], []>} : vector<2x32xf32>, vector<32x32xf32>, vector<2x32xf32> -> vector<2x32xf32>
    %c0_3 = arith.constant 0 : index
    %c0_4 = arith.constant 0 : index
    %3 = vector.load %arg3[%c0_3, %c0_4] : memref<1x32xf32, #tpu.memory_space<vmem>>, vector<1x32xf32>
    %4 = vector.broadcast %3 : vector<1x32xf32> to vector<2x32xf32>
    %5 = arith.addf %2, %4 : vector<2x32xf32>
    %c0_5 = arith.constant 0 : index
    %c0_6 = arith.constant 0 : index
    %6 = vector.load %arg4[%c0_5, %c0_6] : memref<1x32xf32, #tpu.memory_space<vmem>>, vector<1x32xf32>
    %c0_7 = arith.constant 0 : index
    %c0_8 = arith.constant 0 : index
    %7 = vector.load %arg5[%c0_7, %c0_8] : memref<1x32xf32, #tpu.memory_space<vmem>>, vector<1x32xf32>
    %cst_9 = arith.constant dense<0.000000e+00> : vector<2xf32>
    %8 = vector.multi_reduction <add>, %5, %cst_9 [1] : vector<2x32xf32> to vector<2xf32>
    %9 = vector.shape_cast %8 : vector<2xf32> to vector<2x1xf32>
    %cst_10 = arith.constant 3.200000e+01 : f32
    %10 = vector.broadcast %cst_10 : f32 to vector<2x1xf32>
    %11 = arith.divf %9, %10 : vector<2x1xf32>
    %12 = vector.broadcast %11 : vector<2x1xf32> to vector<2x32xf32>
    %13 = arith.subf %5, %12 : vector<2x32xf32>
    %14 = arith.mulf %13, %13 : vector<2x32xf32>
    %cst_11 = arith.constant dense<0.000000e+00> : vector<2xf32>
    %15 = vector.multi_reduction <add>, %14, %cst_11 [1] : vector<2x32xf32> to vector<2xf32>
    %16 = vector.shape_cast %15 : vector<2xf32> to vector<2x1xf32>
    %cst_12 = arith.constant 3.200000e+01 : f32
    %17 = vector.broadcast %cst_12 : f32 to vector<2x1xf32>
    %18 = arith.divf %16, %17 : vector<2x1xf32>
    %19 = vector.broadcast %11 : vector<2x1xf32> to vector<2x32xf32>
    %20 = arith.subf %5, %19 : vector<2x32xf32>
    %cst_13 = arith.constant 9.99999974E-6 : f32
    %21 = vector.broadcast %cst_13 : f32 to vector<2x1xf32>
    %22 = arith.addf %18, %21 : vector<2x1xf32>
    %23 = math.rsqrt %22 : vector<2x1xf32>
    %24 = vector.broadcast %23 : vector<2x1xf32> to vector<2x32xf32>
    %25 = arith.mulf %20, %24 : vector<2x32xf32>
    %26 = vector.broadcast %6 : vector<1x32xf32> to vector<2x32xf32>
    %27 = arith.mulf %25, %26 : vector<2x32xf32>
    %28 = vector.broadcast %7 : vector<1x32xf32> to vector<2x32xf32>
    %29 = arith.addf %27, %28 : vector<2x32xf32>
    %30 = math.tanh %29 : vector<2x32xf32>
    %c0_14 = arith.constant 0 : index
    %c0_15 = arith.constant 0 : index
    %31 = vector.load %arg9[%c0_14, %c0_15] : memref<2x32xf32, #tpu.memory_space<vmem>>, vector<2x32xf32>
    tpu.vector_store %arg9[%c0_14, %c0_15], %30 {strides = array<i32>} : memref<2x32xf32, #tpu.memory_space<vmem>>, vector<2x32xf32>,
    %c0_16 = arith.constant 0 : index
    %c0_17 = arith.constant 0 : index
    %32 = vector.load %arg6[%c0_16, %c0_17] : memref<32x2xf32, #tpu.memory_space<vmem>>, vector<32x2xf32>
    %cst_18 = arith.constant dense<0.000000e+00> : vector<2x2xf32>
    %33 = tpu.matmul %30, %32, %cst_18 {dimension_numbers = #tpu.dot_dimension_numbers<[1], [0], [0], [1], [0, 0, 1, 1], [], []>} : vector<2x32xf32>, vector<32x2xf32>, vector<2x2xf32> -> vector<2x2xf32>
    %c0_19 = arith.constant 0 : index
    %c0_20 = arith.constant 0 : index
    %34 = vector.load %arg7[%c0_19, %c0_20] : memref<32x2xf32, #tpu.memory_space<vmem>>, vector<32x2xf32>
    %cst_21 = arith.constant dense<0.000000e+00> : vector<2x2xf32>
    %35 = tpu.matmul %0, %34, %cst_21 {dimension_numbers = #tpu.dot_dimension_numbers<[1], [0], [0], [1], [0, 0, 1, 1], [], []>} : vector<2x32xf32>, vector<32x2xf32>, vector<2x2xf32> -> vector<2x2xf32>
    %36 = arith.addf %33, %35 : vector<2x2xf32>
    %c0_22 = arith.constant 0 : index
    %c0_23 = arith.constant 0 : index
    %37 = vector.load %arg8[%c0_22, %c0_23] : memref<1x2xf32, #tpu.memory_space<vmem>>, vector<1x2xf32>
    %38 = vector.broadcast %37 : vector<1x2xf32> to vector<2x2xf32>
    %39 = arith.addf %36, %38 : vector<2x2xf32>
    %cst_24 = arith.constant dense<0xFF800000> : vector<2xf32>
    %40 = vector.multi_reduction <maximumf>, %39, %cst_24 [1] : vector<2x2xf32> to vector<2xf32>
    %41 = vector.shape_cast %40 : vector<2xf32> to vector<2x1xf32>
    %42 = vector.broadcast %41 : vector<2x1xf32> to vector<2x2xf32>
    %43 = arith.subf %39, %42 : vector<2x2xf32>
    %44 = math.exp %43 : vector<2x2xf32>
    %cst_25 = arith.constant dense<0.000000e+00> : vector<2xf32>
    %45 = vector.multi_reduction <add>, %44, %cst_25 [1] : vector<2x2xf32> to vector<2xf32>
    %46 = vector.shape_cast %45 : vector<2xf32> to vector<2x1xf32>
    %47 = math.log %46 : vector<2x1xf32>
    %48 = arith.addf %47, %41 : vector<2x1xf32>
    %49 = vector.broadcast %48 : vector<2x1xf32> to vector<2x2xf32>
    %50 = arith.subf %39, %49 : vector<2x2xf32>
    %c0_26 = arith.constant 0 : index
    %c0_27 = arith.constant 0 : index
    %51 = vector.load %arg10[%c0_26, %c0_27] : memref<2x2xf32, #tpu.memory_space<vmem>>, vector<2x2xf32>
    tpu.vector_store %arg10[%c0_26, %c0_27], %50 {strides = array<i32>} : memref<2x2xf32, #tpu.memory_space<vmem>>, vector<2x2xf32>,
    return
  }
  func.func @transform_0(%arg0: i32) -> (i32, i32) {
    %c0_i32 = arith.constant 0 : i32
    %c0_i32_0 = arith.constant 0 : i32
    %c0_i32_1 = arith.constant 0 : i32
    return %c0_i32, %c0_i32_0 : i32, i32
  }
  func.func @transform_1(%arg0: i32) -> (i32, i32) {
    %c0_i32 = arith.constant 0 : i32
    %c0_i32_0 = arith.constant 0 : i32
    %c0_i32_1 = arith.constant 0 : i32
    return %c0_i32, %c0_i32_0 : i32, i32
  }
  func.func @transform_2(%arg0: i32) -> (i32, i32) {
    %c0_i32 = arith.constant 0 : i32
    %c0_i32_0 = arith.constant 0 : i32
    %c0_i32_1 = arith.constant 0 : i32
    return %c0_i32, %c0_i32_0 : i32, i32
  }
  func.func @transform_3(%arg0: i32) -> (i32, i32) {
    %c0_i32 = arith.constant 0 : i32
    %c0_i32_0 = arith.constant 0 : i32
    %c0_i32_1 = arith.constant 0 : i32
    return %c0_i32, %c0_i32_0 : i32, i32
  }
  func.func @transform_4(%arg0: i32) -> (i32, i32) {
    %c0_i32 = arith.constant 0 : i32
    %c0_i32_0 = arith.constant 0 : i32
    %c0_i32_1 = arith.constant 0 : i32
    return %c0_i32, %c0_i32_0 : i32, i32
  }
  func.func @transform_5(%arg0: i32) -> (i32, i32) {
    %c0_i32 = arith.constant 0 : i32
    %c0_i32_0 = arith.constant 0 : i32
    %c0_i32_1 = arith.constant 0 : i32
    return %c0_i32, %c0_i32_0 : i32, i32
  }
  func.func @transform_6(%arg0: i32) -> (i32, i32) {
    %c0_i32 = arith.constant 0 : i32
    %c0_i32_0 = arith.constant 0 : i32
    %c0_i32_1 = arith.constant 0 : i32
    return %c0_i32, %c0_i32_0 : i32, i32
  }
  func.func @transform_7(%arg0: i32) -> (i32, i32) {
    %c0_i32 = arith.constant 0 : i32
    %c0_i32_0 = arith.constant 0 : i32
    %c0_i32_1 = arith.constant 0 : i32
    return %c0_i32, %c0_i32_0 : i32, i32
  }
  func.func @transform_8(%arg0: i32) -> (i32, i32) {
    %c0_i32 = arith.constant 0 : i32
    %c0_i32_0 = arith.constant 0 : i32
    %c0_i32_1 = arith.constant 0 : i32
    return %c0_i32, %c0_i32_0 : i32, i32
  }
  func.func @transform_9(%arg0: i32) -> (i32, i32) {
    %c0_i32 = arith.constant 0 : i32
    %c0_i32_0 = arith.constant 0 : i32
    %c0_i32_1 = arith.constant 0 : i32
    return %c0_i32, %c0_i32_0 : i32, i32
  }
}

module attributes {stable_mosaic.version = 11 : i64} {
  func.func @_expand_ctx_kernel(%arg0: i32, %arg1: memref<2x32xf32, #tpu.memory_space<vmem>>, %arg2: memref<2x32xf32, #tpu.memory_space<vmem>>, %arg3: memref<2x2xf32, #tpu.memory_space<vmem>>, %arg4: memref<32x64xf32, #tpu.memory_space<vmem>>, %arg5: memref<32x64xf32, #tpu.memory_space<vmem>>, %arg6: memref<1x64xf32, #tpu.memory_space<vmem>>, %arg7: memref<1x32xf32, #tpu.memory_space<vmem>>, %arg8: memref<1x32xf32, #tpu.memory_space<vmem>>, %arg9: memref<32x2xf32, #tpu.memory_space<vmem>>, %arg10: memref<1x2xf32, #tpu.memory_space<vmem>>, %arg11: memref<2x64xf32, #tpu.memory_space<vmem>>, %arg12: memref<2x4xf32, #tpu.memory_space<vmem>>) attributes {dimension_semantics = [#tpu.dimension_semantics<parallel>], iteration_bounds = array<i64: 1>, scalar_prefetch = 0 : i64, scratch_operands = 0 : i64, tpu.core_type = #tpu.core_type<tc>, window_params = [{transform_indices = @transform_0, window_bounds = array<i64: 2, 32>}, {transform_indices = @transform_1, window_bounds = array<i64: 2, 32>}, {transform_indices = @transform_2, window_bounds = array<i64: 2, 2>}, {pipeline_mode = #tpu.pipeline_mode<synchronous>, transform_indices = @transform_3, window_bounds = array<i64: 32, 64>}, {pipeline_mode = #tpu.pipeline_mode<synchronous>, transform_indices = @transform_4, window_bounds = array<i64: 32, 64>}, {pipeline_mode = #tpu.pipeline_mode<synchronous>, transform_indices = @transform_5, window_bounds = array<i64: 1, 64>}, {pipeline_mode = #tpu.pipeline_mode<synchronous>, transform_indices = @transform_6, window_bounds = array<i64: 1, 32>}, {pipeline_mode = #tpu.pipeline_mode<synchronous>, transform_indices = @transform_7, window_bounds = array<i64: 1, 32>}, {pipeline_mode = #tpu.pipeline_mode<synchronous>, transform_indices = @transform_8, window_bounds = array<i64: 32, 2>}, {pipeline_mode = #tpu.pipeline_mode<synchronous>, transform_indices = @transform_9, window_bounds = array<i64: 1, 2>}, {transform_indices = @transform_10, window_bounds = array<i64: 2, 64>}, {transform_indices = @transform_11, window_bounds = array<i64: 2, 4>}]} {
    %c0 = arith.constant 0 : index
    %c0_0 = arith.constant 0 : index
    %0 = vector.load %arg1[%c0, %c0_0] : memref<2x32xf32, #tpu.memory_space<vmem>>, vector<2x32xf32>
    %c0_1 = arith.constant 0 : index
    %c0_2 = arith.constant 0 : index
    %1 = vector.load %arg2[%c0_1, %c0_2] : memref<2x32xf32, #tpu.memory_space<vmem>>, vector<2x32xf32>
    %c0_3 = arith.constant 0 : index
    %c0_4 = arith.constant 0 : index
    %2 = vector.load %arg3[%c0_3, %c0_4] : memref<2x2xf32, #tpu.memory_space<vmem>>, vector<2x2xf32>
    %c0_5 = arith.constant 0 : index
    %c0_6 = arith.constant 0 : index
    %3 = vector.load %arg4[%c0_5, %c0_6] : memref<32x64xf32, #tpu.memory_space<vmem>>, vector<32x64xf32>
    %c0_7 = arith.constant 0 : index
    %c0_8 = arith.constant 0 : index
    %4 = vector.load %arg5[%c0_7, %c0_8] : memref<32x64xf32, #tpu.memory_space<vmem>>, vector<32x64xf32>
    %c0_9 = arith.constant 0 : index
    %c0_10 = arith.constant 0 : index
    %5 = vector.load %arg6[%c0_9, %c0_10] : memref<1x64xf32, #tpu.memory_space<vmem>>, vector<1x64xf32>
    %c0_11 = arith.constant 0 : index
    %c0_12 = arith.constant 0 : index
    %6 = vector.load %arg7[%c0_11, %c0_12] : memref<1x32xf32, #tpu.memory_space<vmem>>, vector<1x32xf32>
    %c0_13 = arith.constant 0 : index
    %c0_14 = arith.constant 0 : index
    %7 = vector.load %arg8[%c0_13, %c0_14] : memref<1x32xf32, #tpu.memory_space<vmem>>, vector<1x32xf32>
    %c0_15 = arith.constant 0 : index
    %c0_16 = arith.constant 0 : index
    %8 = vector.load %arg9[%c0_15, %c0_16] : memref<32x2xf32, #tpu.memory_space<vmem>>, vector<32x2xf32>
    %c0_17 = arith.constant 0 : index
    %c0_18 = arith.constant 0 : index
    %9 = vector.load %arg10[%c0_17, %c0_18] : memref<1x2xf32, #tpu.memory_space<vmem>>, vector<1x2xf32>
    %cst = arith.constant dense<0.000000e+00> : vector<2x64xf32>
    %10 = tpu.matmul %0, %3, %cst {dimension_numbers = #tpu.dot_dimension_numbers<[1], [0], [0], [1], [0, 0, 1, 1], [], []>} : vector<2x32xf32>, vector<32x64xf32>, vector<2x64xf32> -> vector<2x64xf32>
    %cst_19 = arith.constant dense<0.000000e+00> : vector<2x64xf32>
    %11 = tpu.matmul %1, %4, %cst_19 {dimension_numbers = #tpu.dot_dimension_numbers<[1], [0], [0], [1], [0, 0, 1, 1], [], []>} : vector<2x32xf32>, vector<32x64xf32>, vector<2x64xf32> -> vector<2x64xf32>
    %12 = arith.addf %10, %11 : vector<2x64xf32>
    %13 = vector.broadcast %5 : vector<1x64xf32> to vector<2x64xf32>
    %14 = arith.addf %12, %13 : vector<2x64xf32>
    %15 = vector.extract_strided_slice %14 {offsets = [0, 0], sizes = [2, 32], strides = [1, 1]} : vector<2x64xf32> to vector<2x32xf32>
    %cst_20 = arith.constant dense<0.000000e+00> : vector<2xf32>
    %16 = vector.multi_reduction <add>, %15, %cst_20 [1] : vector<2x32xf32> to vector<2xf32>
    %17 = vector.shape_cast %16 : vector<2xf32> to vector<2x1xf32>
    %cst_21 = arith.constant 3.200000e+01 : f32
    %18 = vector.broadcast %cst_21 : f32 to vector<2x1xf32>
    %19 = arith.divf %17, %18 : vector<2x1xf32>
    %20 = vector.broadcast %19 : vector<2x1xf32> to vector<2x32xf32>
    %21 = arith.subf %15, %20 : vector<2x32xf32>
    %22 = arith.mulf %21, %21 : vector<2x32xf32>
    %cst_22 = arith.constant dense<0.000000e+00> : vector<2xf32>
    %23 = vector.multi_reduction <add>, %22, %cst_22 [1] : vector<2x32xf32> to vector<2xf32>
    %24 = vector.shape_cast %23 : vector<2xf32> to vector<2x1xf32>
    %cst_23 = arith.constant 3.200000e+01 : f32
    %25 = vector.broadcast %cst_23 : f32 to vector<2x1xf32>
    %26 = arith.divf %24, %25 : vector<2x1xf32>
    %27 = vector.broadcast %19 : vector<2x1xf32> to vector<2x32xf32>
    %28 = arith.subf %15, %27 : vector<2x32xf32>
    %cst_24 = arith.constant 9.99999974E-6 : f32
    %29 = vector.broadcast %cst_24 : f32 to vector<2x1xf32>
    %30 = arith.addf %26, %29 : vector<2x1xf32>
    %31 = math.rsqrt %30 : vector<2x1xf32>
    %32 = vector.broadcast %31 : vector<2x1xf32> to vector<2x32xf32>
    %33 = arith.mulf %28, %32 : vector<2x32xf32>
    %34 = vector.broadcast %6 : vector<1x32xf32> to vector<2x32xf32>
    %35 = arith.mulf %33, %34 : vector<2x32xf32>
    %36 = vector.broadcast %7 : vector<1x32xf32> to vector<2x32xf32>
    %37 = arith.addf %35, %36 : vector<2x32xf32>
    %38 = math.tanh %37 : vector<2x32xf32>
    %39 = vector.extract_strided_slice %14 {offsets = [0, 32], sizes = [2, 32], strides = [1, 1]} : vector<2x64xf32> to vector<2x32xf32>
    %cst_25 = arith.constant dense<0.000000e+00> : vector<2xf32>
    %40 = vector.multi_reduction <add>, %39, %cst_25 [1] : vector<2x32xf32> to vector<2xf32>
    %41 = vector.shape_cast %40 : vector<2xf32> to vector<2x1xf32>
    %cst_26 = arith.constant 3.200000e+01 : f32
    %42 = vector.broadcast %cst_26 : f32 to vector<2x1xf32>
    %43 = arith.divf %41, %42 : vector<2x1xf32>
    %44 = vector.broadcast %43 : vector<2x1xf32> to vector<2x32xf32>
    %45 = arith.subf %39, %44 : vector<2x32xf32>
    %46 = arith.mulf %45, %45 : vector<2x32xf32>
    %cst_27 = arith.constant dense<0.000000e+00> : vector<2xf32>
    %47 = vector.multi_reduction <add>, %46, %cst_27 [1] : vector<2x32xf32> to vector<2xf32>
    %48 = vector.shape_cast %47 : vector<2xf32> to vector<2x1xf32>
    %cst_28 = arith.constant 3.200000e+01 : f32
    %49 = vector.broadcast %cst_28 : f32 to vector<2x1xf32>
    %50 = arith.divf %48, %49 : vector<2x1xf32>
    %51 = vector.broadcast %43 : vector<2x1xf32> to vector<2x32xf32>
    %52 = arith.subf %39, %51 : vector<2x32xf32>
    %cst_29 = arith.constant 9.99999974E-6 : f32
    %53 = vector.broadcast %cst_29 : f32 to vector<2x1xf32>
    %54 = arith.addf %50, %53 : vector<2x1xf32>
    %55 = math.rsqrt %54 : vector<2x1xf32>
    %56 = vector.broadcast %55 : vector<2x1xf32> to vector<2x32xf32>
    %57 = arith.mulf %52, %56 : vector<2x32xf32>
    %58 = vector.broadcast %6 : vector<1x32xf32> to vector<2x32xf32>
    %59 = arith.mulf %57, %58 : vector<2x32xf32>
    %60 = vector.broadcast %7 : vector<1x32xf32> to vector<2x32xf32>
    %61 = arith.addf %59, %60 : vector<2x32xf32>
    %62 = math.tanh %61 : vector<2x32xf32>
    %cst_30 = arith.constant dense<0.000000e+00> : vector<2x2xf32>
    %63 = tpu.matmul %38, %8, %cst_30 {dimension_numbers = #tpu.dot_dimension_numbers<[1], [0], [0], [1], [0, 0, 1, 1], [], []>} : vector<2x32xf32>, vector<32x2xf32>, vector<2x2xf32> -> vector<2x2xf32>
    %64 = vector.broadcast %9 : vector<1x2xf32> to vector<2x2xf32>
    %65 = arith.addf %63, %64 : vector<2x2xf32>
    %cst_31 = arith.constant dense<0.000000e+00> : vector<2x2xf32>
    %66 = tpu.matmul %62, %8, %cst_31 {dimension_numbers = #tpu.dot_dimension_numbers<[1], [0], [0], [1], [0, 0, 1, 1], [], []>} : vector<2x32xf32>, vector<32x2xf32>, vector<2x2xf32> -> vector<2x2xf32>
    %67 = vector.broadcast %9 : vector<1x2xf32> to vector<2x2xf32>
    %68 = arith.addf %66, %67 : vector<2x2xf32>
    %69 = vector.extract_strided_slice %2 {offsets = [0, 1], sizes = [2, 1], strides = [1, 1]} : vector<2x2xf32> to vector<2x1xf32>
    %cst_32 = arith.constant 5.000000e-01 : f32
    %70 = vector.broadcast %cst_32 : f32 to vector<2x1xf32>
    %71 = arith.mulf %70, %69 : vector<2x1xf32>
    %72 = tpu.concatenate %38, %62 in 1 : vector<2x32xf32>, vector<2x32xf32> -> vector<2x64xf32>
    %cst_33 = arith.constant dense<0xFF800000> : vector<2xf32>
    %73 = vector.multi_reduction <maximumf>, %65, %cst_33 [1] : vector<2x2xf32> to vector<2xf32>
    %74 = vector.shape_cast %73 : vector<2xf32> to vector<2x1xf32>
    %75 = vector.broadcast %74 : vector<2x1xf32> to vector<2x2xf32>
    %76 = arith.subf %65, %75 : vector<2x2xf32>
    %77 = math.exp %76 : vector<2x2xf32>
    %cst_34 = arith.constant dense<0.000000e+00> : vector<2xf32>
    %78 = vector.multi_reduction <add>, %77, %cst_34 [1] : vector<2x2xf32> to vector<2xf32>
    %79 = vector.shape_cast %78 : vector<2xf32> to vector<2x1xf32>
    %80 = math.log %79 : vector<2x1xf32>
    %81 = arith.addf %80, %74 : vector<2x1xf32>
    %82 = vector.broadcast %81 : vector<2x1xf32> to vector<2x2xf32>
    %83 = arith.subf %65, %82 : vector<2x2xf32>
    %84 = vector.broadcast %71 : vector<2x1xf32> to vector<2x2xf32>
    %85 = arith.addf %84, %83 : vector<2x2xf32>
    %cst_35 = arith.constant dense<0xFF800000> : vector<2xf32>
    %86 = vector.multi_reduction <maximumf>, %68, %cst_35 [1] : vector<2x2xf32> to vector<2xf32>
    %87 = vector.shape_cast %86 : vector<2xf32> to vector<2x1xf32>
    %88 = vector.broadcast %87 : vector<2x1xf32> to vector<2x2xf32>
    %89 = arith.subf %68, %88 : vector<2x2xf32>
    %90 = math.exp %89 : vector<2x2xf32>
    %cst_36 = arith.constant dense<0.000000e+00> : vector<2xf32>
    %91 = vector.multi_reduction <add>, %90, %cst_36 [1] : vector<2x2xf32> to vector<2xf32>
    %92 = vector.shape_cast %91 : vector<2xf32> to vector<2x1xf32>
    %93 = math.log %92 : vector<2x1xf32>
    %94 = arith.addf %93, %87 : vector<2x1xf32>
    %95 = vector.broadcast %94 : vector<2x1xf32> to vector<2x2xf32>
    %96 = arith.subf %68, %95 : vector<2x2xf32>
    %97 = vector.broadcast %71 : vector<2x1xf32> to vector<2x2xf32>
    %98 = arith.addf %97, %96 : vector<2x2xf32>
    %99 = tpu.concatenate %85, %98 in 1 : vector<2x2xf32>, vector<2x2xf32> -> vector<2x4xf32>
    %c0_37 = arith.constant 0 : index
    %c0_38 = arith.constant 0 : index
    %100 = vector.load %arg11[%c0_37, %c0_38] : memref<2x64xf32, #tpu.memory_space<vmem>>, vector<2x64xf32>
    tpu.vector_store %arg11[%c0_37, %c0_38], %72 {strides = array<i32>} : memref<2x64xf32, #tpu.memory_space<vmem>>, vector<2x64xf32>,
    %c0_39 = arith.constant 0 : index
    %c0_40 = arith.constant 0 : index
    %101 = vector.load %arg12[%c0_39, %c0_40] : memref<2x4xf32, #tpu.memory_space<vmem>>, vector<2x4xf32>
    tpu.vector_store %arg12[%c0_39, %c0_40], %99 {strides = array<i32>} : memref<2x4xf32, #tpu.memory_space<vmem>>, vector<2x4xf32>,
    return
  }
  func.func @transform_0(%arg0: i32) -> (i32, i32) {
    %c0_i32 = arith.constant 0 : i32
    %c0_i32_0 = arith.constant 0 : i32
    return %arg0, %c0_i32 : i32, i32
  }
  func.func @transform_1(%arg0: i32) -> (i32, i32) {
    %c0_i32 = arith.constant 0 : i32
    %c0_i32_0 = arith.constant 0 : i32
    return %arg0, %c0_i32 : i32, i32
  }
  func.func @transform_2(%arg0: i32) -> (i32, i32) {
    %c0_i32 = arith.constant 0 : i32
    %c0_i32_0 = arith.constant 0 : i32
    return %arg0, %c0_i32 : i32, i32
  }
  func.func @transform_3(%arg0: i32) -> (i32, i32) {
    %c0_i32 = arith.constant 0 : i32
    %c0_i32_0 = arith.constant 0 : i32
    %c0_i32_1 = arith.constant 0 : i32
    return %c0_i32, %c0_i32_0 : i32, i32
  }
  func.func @transform_4(%arg0: i32) -> (i32, i32) {
    %c0_i32 = arith.constant 0 : i32
    %c0_i32_0 = arith.constant 0 : i32
    %c0_i32_1 = arith.constant 0 : i32
    return %c0_i32, %c0_i32_0 : i32, i32
  }
  func.func @transform_5(%arg0: i32) -> (i32, i32) {
    %c0_i32 = arith.constant 0 : i32
    %c0_i32_0 = arith.constant 0 : i32
    %c0_i32_1 = arith.constant 0 : i32
    return %c0_i32, %c0_i32_0 : i32, i32
  }
  func.func @transform_6(%arg0: i32) -> (i32, i32) {
    %c0_i32 = arith.constant 0 : i32
    %c0_i32_0 = arith.constant 0 : i32
    %c0_i32_1 = arith.constant 0 : i32
    return %c0_i32, %c0_i32_0 : i32, i32
  }
  func.func @transform_7(%arg0: i32) -> (i32, i32) {
    %c0_i32 = arith.constant 0 : i32
    %c0_i32_0 = arith.constant 0 : i32
    %c0_i32_1 = arith.constant 0 : i32
    return %c0_i32, %c0_i32_0 : i32, i32
  }
  func.func @transform_8(%arg0: i32) -> (i32, i32) {
    %c0_i32 = arith.constant 0 : i32
    %c0_i32_0 = arith.constant 0 : i32
    %c0_i32_1 = arith.constant 0 : i32
    return %c0_i32, %c0_i32_0 : i32, i32
  }
  func.func @transform_9(%arg0: i32) -> (i32, i32) {
    %c0_i32 = arith.constant 0 : i32
    %c0_i32_0 = arith.constant 0 : i32
    %c0_i32_1 = arith.constant 0 : i32
    return %c0_i32, %c0_i32_0 : i32, i32
  }
  func.func @transform_10(%arg0: i32) -> (i32, i32) {
    %c0_i32 = arith.constant 0 : i32
    %c0_i32_0 = arith.constant 0 : i32
    return %arg0, %c0_i32 : i32, i32
  }
  func.func @transform_11(%arg0: i32) -> (i32, i32) {
    %c0_i32 = arith.constant 0 : i32
    %c0_i32_0 = arith.constant 0 : i32
    return %arg0, %c0_i32 : i32, i32
  }
}

module attributes {stable_mosaic.version = 11 : i64} {
  func.func @_expand_noctx_kernel(%arg0: i32, %arg1: memref<4x32xf32, #tpu.memory_space<vmem>>, %arg2: memref<4x2xf32, #tpu.memory_space<vmem>>, %arg3: memref<32x64xf32, #tpu.memory_space<vmem>>, %arg4: memref<1x64xf32, #tpu.memory_space<vmem>>, %arg5: memref<1x32xf32, #tpu.memory_space<vmem>>, %arg6: memref<1x32xf32, #tpu.memory_space<vmem>>, %arg7: memref<32x2xf32, #tpu.memory_space<vmem>>, %arg8: memref<1x2xf32, #tpu.memory_space<vmem>>, %arg9: memref<4x64xf32, #tpu.memory_space<vmem>>, %arg10: memref<4x4xf32, #tpu.memory_space<vmem>>) attributes {dimension_semantics = [#tpu.dimension_semantics<parallel>], iteration_bounds = array<i64: 1>, scalar_prefetch = 0 : i64, scratch_operands = 0 : i64, tpu.core_type = #tpu.core_type<tc>, window_params = [{transform_indices = @transform_0, window_bounds = array<i64: 4, 32>}, {transform_indices = @transform_1, window_bounds = array<i64: 4, 2>}, {pipeline_mode = #tpu.pipeline_mode<synchronous>, transform_indices = @transform_2, window_bounds = array<i64: 32, 64>}, {pipeline_mode = #tpu.pipeline_mode<synchronous>, transform_indices = @transform_3, window_bounds = array<i64: 1, 64>}, {pipeline_mode = #tpu.pipeline_mode<synchronous>, transform_indices = @transform_4, window_bounds = array<i64: 1, 32>}, {pipeline_mode = #tpu.pipeline_mode<synchronous>, transform_indices = @transform_5, window_bounds = array<i64: 1, 32>}, {pipeline_mode = #tpu.pipeline_mode<synchronous>, transform_indices = @transform_6, window_bounds = array<i64: 32, 2>}, {pipeline_mode = #tpu.pipeline_mode<synchronous>, transform_indices = @transform_7, window_bounds = array<i64: 1, 2>}, {transform_indices = @transform_8, window_bounds = array<i64: 4, 64>}, {transform_indices = @transform_9, window_bounds = array<i64: 4, 4>}]} {
    %c0 = arith.constant 0 : index
    %c0_0 = arith.constant 0 : index
    %0 = vector.load %arg1[%c0, %c0_0] : memref<4x32xf32, #tpu.memory_space<vmem>>, vector<4x32xf32>
    %c0_1 = arith.constant 0 : index
    %c0_2 = arith.constant 0 : index
    %1 = vector.load %arg2[%c0_1, %c0_2] : memref<4x2xf32, #tpu.memory_space<vmem>>, vector<4x2xf32>
    %c0_3 = arith.constant 0 : index
    %c0_4 = arith.constant 0 : index
    %2 = vector.load %arg3[%c0_3, %c0_4] : memref<32x64xf32, #tpu.memory_space<vmem>>, vector<32x64xf32>
    %c0_5 = arith.constant 0 : index
    %c0_6 = arith.constant 0 : index
    %3 = vector.load %arg4[%c0_5, %c0_6] : memref<1x64xf32, #tpu.memory_space<vmem>>, vector<1x64xf32>
    %c0_7 = arith.constant 0 : index
    %c0_8 = arith.constant 0 : index
    %4 = vector.load %arg5[%c0_7, %c0_8] : memref<1x32xf32, #tpu.memory_space<vmem>>, vector<1x32xf32>
    %c0_9 = arith.constant 0 : index
    %c0_10 = arith.constant 0 : index
    %5 = vector.load %arg6[%c0_9, %c0_10] : memref<1x32xf32, #tpu.memory_space<vmem>>, vector<1x32xf32>
    %c0_11 = arith.constant 0 : index
    %c0_12 = arith.constant 0 : index
    %6 = vector.load %arg7[%c0_11, %c0_12] : memref<32x2xf32, #tpu.memory_space<vmem>>, vector<32x2xf32>
    %c0_13 = arith.constant 0 : index
    %c0_14 = arith.constant 0 : index
    %7 = vector.load %arg8[%c0_13, %c0_14] : memref<1x2xf32, #tpu.memory_space<vmem>>, vector<1x2xf32>
    %cst = arith.constant dense<0.000000e+00> : vector<4x64xf32>
    %8 = tpu.matmul %0, %2, %cst {dimension_numbers = #tpu.dot_dimension_numbers<[1], [0], [0], [1], [0, 0, 1, 1], [], []>} : vector<4x32xf32>, vector<32x64xf32>, vector<4x64xf32> -> vector<4x64xf32>
    %9 = vector.broadcast %3 : vector<1x64xf32> to vector<4x64xf32>
    %10 = arith.addf %8, %9 : vector<4x64xf32>
    %11 = vector.extract_strided_slice %10 {offsets = [0, 0], sizes = [4, 32], strides = [1, 1]} : vector<4x64xf32> to vector<4x32xf32>
    %cst_15 = arith.constant dense<0.000000e+00> : vector<4xf32>
    %12 = vector.multi_reduction <add>, %11, %cst_15 [1] : vector<4x32xf32> to vector<4xf32>
    %13 = vector.shape_cast %12 : vector<4xf32> to vector<4x1xf32>
    %cst_16 = arith.constant 3.200000e+01 : f32
    %14 = vector.broadcast %cst_16 : f32 to vector<4x1xf32>
    %15 = arith.divf %13, %14 : vector<4x1xf32>
    %16 = vector.broadcast %15 : vector<4x1xf32> to vector<4x32xf32>
    %17 = arith.subf %11, %16 : vector<4x32xf32>
    %18 = arith.mulf %17, %17 : vector<4x32xf32>
    %cst_17 = arith.constant dense<0.000000e+00> : vector<4xf32>
    %19 = vector.multi_reduction <add>, %18, %cst_17 [1] : vector<4x32xf32> to vector<4xf32>
    %20 = vector.shape_cast %19 : vector<4xf32> to vector<4x1xf32>
    %cst_18 = arith.constant 3.200000e+01 : f32
    %21 = vector.broadcast %cst_18 : f32 to vector<4x1xf32>
    %22 = arith.divf %20, %21 : vector<4x1xf32>
    %23 = vector.broadcast %15 : vector<4x1xf32> to vector<4x32xf32>
    %24 = arith.subf %11, %23 : vector<4x32xf32>
    %cst_19 = arith.constant 9.99999974E-6 : f32
    %25 = vector.broadcast %cst_19 : f32 to vector<4x1xf32>
    %26 = arith.addf %22, %25 : vector<4x1xf32>
    %27 = math.rsqrt %26 : vector<4x1xf32>
    %28 = vector.broadcast %27 : vector<4x1xf32> to vector<4x32xf32>
    %29 = arith.mulf %24, %28 : vector<4x32xf32>
    %30 = vector.broadcast %4 : vector<1x32xf32> to vector<4x32xf32>
    %31 = arith.mulf %29, %30 : vector<4x32xf32>
    %32 = vector.broadcast %5 : vector<1x32xf32> to vector<4x32xf32>
    %33 = arith.addf %31, %32 : vector<4x32xf32>
    %34 = math.tanh %33 : vector<4x32xf32>
    %35 = vector.extract_strided_slice %10 {offsets = [0, 32], sizes = [4, 32], strides = [1, 1]} : vector<4x64xf32> to vector<4x32xf32>
    %cst_20 = arith.constant dense<0.000000e+00> : vector<4xf32>
    %36 = vector.multi_reduction <add>, %35, %cst_20 [1] : vector<4x32xf32> to vector<4xf32>
    %37 = vector.shape_cast %36 : vector<4xf32> to vector<4x1xf32>
    %cst_21 = arith.constant 3.200000e+01 : f32
    %38 = vector.broadcast %cst_21 : f32 to vector<4x1xf32>
    %39 = arith.divf %37, %38 : vector<4x1xf32>
    %40 = vector.broadcast %39 : vector<4x1xf32> to vector<4x32xf32>
    %41 = arith.subf %35, %40 : vector<4x32xf32>
    %42 = arith.mulf %41, %41 : vector<4x32xf32>
    %cst_22 = arith.constant dense<0.000000e+00> : vector<4xf32>
    %43 = vector.multi_reduction <add>, %42, %cst_22 [1] : vector<4x32xf32> to vector<4xf32>
    %44 = vector.shape_cast %43 : vector<4xf32> to vector<4x1xf32>
    %cst_23 = arith.constant 3.200000e+01 : f32
    %45 = vector.broadcast %cst_23 : f32 to vector<4x1xf32>
    %46 = arith.divf %44, %45 : vector<4x1xf32>
    %47 = vector.broadcast %39 : vector<4x1xf32> to vector<4x32xf32>
    %48 = arith.subf %35, %47 : vector<4x32xf32>
    %cst_24 = arith.constant 9.99999974E-6 : f32
    %49 = vector.broadcast %cst_24 : f32 to vector<4x1xf32>
    %50 = arith.addf %46, %49 : vector<4x1xf32>
    %51 = math.rsqrt %50 : vector<4x1xf32>
    %52 = vector.broadcast %51 : vector<4x1xf32> to vector<4x32xf32>
    %53 = arith.mulf %48, %52 : vector<4x32xf32>
    %54 = vector.broadcast %4 : vector<1x32xf32> to vector<4x32xf32>
    %55 = arith.mulf %53, %54 : vector<4x32xf32>
    %56 = vector.broadcast %5 : vector<1x32xf32> to vector<4x32xf32>
    %57 = arith.addf %55, %56 : vector<4x32xf32>
    %58 = math.tanh %57 : vector<4x32xf32>
    %cst_25 = arith.constant dense<0.000000e+00> : vector<4x2xf32>
    %59 = tpu.matmul %34, %6, %cst_25 {dimension_numbers = #tpu.dot_dimension_numbers<[1], [0], [0], [1], [0, 0, 1, 1], [], []>} : vector<4x32xf32>, vector<32x2xf32>, vector<4x2xf32> -> vector<4x2xf32>
    %60 = vector.broadcast %7 : vector<1x2xf32> to vector<4x2xf32>
    %61 = arith.addf %59, %60 : vector<4x2xf32>
    %cst_26 = arith.constant dense<0.000000e+00> : vector<4x2xf32>
    %62 = tpu.matmul %58, %6, %cst_26 {dimension_numbers = #tpu.dot_dimension_numbers<[1], [0], [0], [1], [0, 0, 1, 1], [], []>} : vector<4x32xf32>, vector<32x2xf32>, vector<4x2xf32> -> vector<4x2xf32>
    %63 = vector.broadcast %7 : vector<1x2xf32> to vector<4x2xf32>
    %64 = arith.addf %62, %63 : vector<4x2xf32>
    %65 = vector.extract_strided_slice %1 {offsets = [0, 1], sizes = [4, 1], strides = [1, 1]} : vector<4x2xf32> to vector<4x1xf32>
    %cst_27 = arith.constant 5.000000e-01 : f32
    %66 = vector.broadcast %cst_27 : f32 to vector<4x1xf32>
    %67 = arith.mulf %66, %65 : vector<4x1xf32>
    %68 = tpu.concatenate %34, %58 in 1 : vector<4x32xf32>, vector<4x32xf32> -> vector<4x64xf32>
    %cst_28 = arith.constant dense<0xFF800000> : vector<4xf32>
    %69 = vector.multi_reduction <maximumf>, %61, %cst_28 [1] : vector<4x2xf32> to vector<4xf32>
    %70 = vector.shape_cast %69 : vector<4xf32> to vector<4x1xf32>
    %71 = vector.broadcast %70 : vector<4x1xf32> to vector<4x2xf32>
    %72 = arith.subf %61, %71 : vector<4x2xf32>
    %73 = math.exp %72 : vector<4x2xf32>
    %cst_29 = arith.constant dense<0.000000e+00> : vector<4xf32>
    %74 = vector.multi_reduction <add>, %73, %cst_29 [1] : vector<4x2xf32> to vector<4xf32>
    %75 = vector.shape_cast %74 : vector<4xf32> to vector<4x1xf32>
    %76 = math.log %75 : vector<4x1xf32>
    %77 = arith.addf %76, %70 : vector<4x1xf32>
    %78 = vector.broadcast %77 : vector<4x1xf32> to vector<4x2xf32>
    %79 = arith.subf %61, %78 : vector<4x2xf32>
    %80 = vector.broadcast %67 : vector<4x1xf32> to vector<4x2xf32>
    %81 = arith.addf %80, %79 : vector<4x2xf32>
    %cst_30 = arith.constant dense<0xFF800000> : vector<4xf32>
    %82 = vector.multi_reduction <maximumf>, %64, %cst_30 [1] : vector<4x2xf32> to vector<4xf32>
    %83 = vector.shape_cast %82 : vector<4xf32> to vector<4x1xf32>
    %84 = vector.broadcast %83 : vector<4x1xf32> to vector<4x2xf32>
    %85 = arith.subf %64, %84 : vector<4x2xf32>
    %86 = math.exp %85 : vector<4x2xf32>
    %cst_31 = arith.constant dense<0.000000e+00> : vector<4xf32>
    %87 = vector.multi_reduction <add>, %86, %cst_31 [1] : vector<4x2xf32> to vector<4xf32>
    %88 = vector.shape_cast %87 : vector<4xf32> to vector<4x1xf32>
    %89 = math.log %88 : vector<4x1xf32>
    %90 = arith.addf %89, %83 : vector<4x1xf32>
    %91 = vector.broadcast %90 : vector<4x1xf32> to vector<4x2xf32>
    %92 = arith.subf %64, %91 : vector<4x2xf32>
    %93 = vector.broadcast %67 : vector<4x1xf32> to vector<4x2xf32>
    %94 = arith.addf %93, %92 : vector<4x2xf32>
    %95 = tpu.concatenate %81, %94 in 1 : vector<4x2xf32>, vector<4x2xf32> -> vector<4x4xf32>
    %c0_32 = arith.constant 0 : index
    %c0_33 = arith.constant 0 : index
    %96 = vector.load %arg9[%c0_32, %c0_33] : memref<4x64xf32, #tpu.memory_space<vmem>>, vector<4x64xf32>
    tpu.vector_store %arg9[%c0_32, %c0_33], %68 {strides = array<i32>} : memref<4x64xf32, #tpu.memory_space<vmem>>, vector<4x64xf32>,
    %c0_34 = arith.constant 0 : index
    %c0_35 = arith.constant 0 : index
    %97 = vector.load %arg10[%c0_34, %c0_35] : memref<4x4xf32, #tpu.memory_space<vmem>>, vector<4x4xf32>
    tpu.vector_store %arg10[%c0_34, %c0_35], %95 {strides = array<i32>} : memref<4x4xf32, #tpu.memory_space<vmem>>, vector<4x4xf32>,
    return
  }
  func.func @transform_0(%arg0: i32) -> (i32, i32) {
    %c0_i32 = arith.constant 0 : i32
    %c0_i32_0 = arith.constant 0 : i32
    return %arg0, %c0_i32 : i32, i32
  }
  func.func @transform_1(%arg0: i32) -> (i32, i32) {
    %c0_i32 = arith.constant 0 : i32
    %c0_i32_0 = arith.constant 0 : i32
    return %arg0, %c0_i32 : i32, i32
  }
  func.func @transform_2(%arg0: i32) -> (i32, i32) {
    %c0_i32 = arith.constant 0 : i32
    %c0_i32_0 = arith.constant 0 : i32
    %c0_i32_1 = arith.constant 0 : i32
    return %c0_i32, %c0_i32_0 : i32, i32
  }
  func.func @transform_3(%arg0: i32) -> (i32, i32) {
    %c0_i32 = arith.constant 0 : i32
    %c0_i32_0 = arith.constant 0 : i32
    %c0_i32_1 = arith.constant 0 : i32
    return %c0_i32, %c0_i32_0 : i32, i32
  }
  func.func @transform_4(%arg0: i32) -> (i32, i32) {
    %c0_i32 = arith.constant 0 : i32
    %c0_i32_0 = arith.constant 0 : i32
    %c0_i32_1 = arith.constant 0 : i32
    return %c0_i32, %c0_i32_0 : i32, i32
  }
  func.func @transform_5(%arg0: i32) -> (i32, i32) {
    %c0_i32 = arith.constant 0 : i32
    %c0_i32_0 = arith.constant 0 : i32
    %c0_i32_1 = arith.constant 0 : i32
    return %c0_i32, %c0_i32_0 : i32, i32
  }
  func.func @transform_6(%arg0: i32) -> (i32, i32) {
    %c0_i32 = arith.constant 0 : i32
    %c0_i32_0 = arith.constant 0 : i32
    %c0_i32_1 = arith.constant 0 : i32
    return %c0_i32, %c0_i32_0 : i32, i32
  }
  func.func @transform_7(%arg0: i32) -> (i32, i32) {
    %c0_i32 = arith.constant 0 : i32
    %c0_i32_0 = arith.constant 0 : i32
    %c0_i32_1 = arith.constant 0 : i32
    return %c0_i32, %c0_i32_0 : i32, i32
  }
  func.func @transform_8(%arg0: i32) -> (i32, i32) {
    %c0_i32 = arith.constant 0 : i32
    %c0_i32_0 = arith.constant 0 : i32
    return %arg0, %c0_i32 : i32, i32
  }
  func.func @transform_9(%arg0: i32) -> (i32, i32) {
    %c0_i32 = arith.constant 0 : i32
    %c0_i32_0 = arith.constant 0 : i32
    return %arg0, %c0_i32 : i32, i32
  }
}

module attributes {stable_mosaic.version = 11 : i64} {
  func.func @_expand_noctx_kernel(%arg0: i32, %arg1: memref<8x32xf32, #tpu.memory_space<vmem>>, %arg2: memref<8x2xf32, #tpu.memory_space<vmem>>, %arg3: memref<32x64xf32, #tpu.memory_space<vmem>>, %arg4: memref<1x64xf32, #tpu.memory_space<vmem>>, %arg5: memref<1x32xf32, #tpu.memory_space<vmem>>, %arg6: memref<1x32xf32, #tpu.memory_space<vmem>>, %arg7: memref<32x2xf32, #tpu.memory_space<vmem>>, %arg8: memref<1x2xf32, #tpu.memory_space<vmem>>, %arg9: memref<8x64xf32, #tpu.memory_space<vmem>>, %arg10: memref<8x4xf32, #tpu.memory_space<vmem>>) attributes {dimension_semantics = [#tpu.dimension_semantics<parallel>], iteration_bounds = array<i64: 1>, scalar_prefetch = 0 : i64, scratch_operands = 0 : i64, tpu.core_type = #tpu.core_type<tc>, window_params = [{transform_indices = @transform_0, window_bounds = array<i64: 8, 32>}, {transform_indices = @transform_1, window_bounds = array<i64: 8, 2>}, {pipeline_mode = #tpu.pipeline_mode<synchronous>, transform_indices = @transform_2, window_bounds = array<i64: 32, 64>}, {pipeline_mode = #tpu.pipeline_mode<synchronous>, transform_indices = @transform_3, window_bounds = array<i64: 1, 64>}, {pipeline_mode = #tpu.pipeline_mode<synchronous>, transform_indices = @transform_4, window_bounds = array<i64: 1, 32>}, {pipeline_mode = #tpu.pipeline_mode<synchronous>, transform_indices = @transform_5, window_bounds = array<i64: 1, 32>}, {pipeline_mode = #tpu.pipeline_mode<synchronous>, transform_indices = @transform_6, window_bounds = array<i64: 32, 2>}, {pipeline_mode = #tpu.pipeline_mode<synchronous>, transform_indices = @transform_7, window_bounds = array<i64: 1, 2>}, {transform_indices = @transform_8, window_bounds = array<i64: 8, 64>}, {transform_indices = @transform_9, window_bounds = array<i64: 8, 4>}]} {
    %c0 = arith.constant 0 : index
    %c0_0 = arith.constant 0 : index
    %0 = vector.load %arg1[%c0, %c0_0] : memref<8x32xf32, #tpu.memory_space<vmem>>, vector<8x32xf32>
    %c0_1 = arith.constant 0 : index
    %c0_2 = arith.constant 0 : index
    %1 = vector.load %arg2[%c0_1, %c0_2] : memref<8x2xf32, #tpu.memory_space<vmem>>, vector<8x2xf32>
    %c0_3 = arith.constant 0 : index
    %c0_4 = arith.constant 0 : index
    %2 = vector.load %arg3[%c0_3, %c0_4] : memref<32x64xf32, #tpu.memory_space<vmem>>, vector<32x64xf32>
    %c0_5 = arith.constant 0 : index
    %c0_6 = arith.constant 0 : index
    %3 = vector.load %arg4[%c0_5, %c0_6] : memref<1x64xf32, #tpu.memory_space<vmem>>, vector<1x64xf32>
    %c0_7 = arith.constant 0 : index
    %c0_8 = arith.constant 0 : index
    %4 = vector.load %arg5[%c0_7, %c0_8] : memref<1x32xf32, #tpu.memory_space<vmem>>, vector<1x32xf32>
    %c0_9 = arith.constant 0 : index
    %c0_10 = arith.constant 0 : index
    %5 = vector.load %arg6[%c0_9, %c0_10] : memref<1x32xf32, #tpu.memory_space<vmem>>, vector<1x32xf32>
    %c0_11 = arith.constant 0 : index
    %c0_12 = arith.constant 0 : index
    %6 = vector.load %arg7[%c0_11, %c0_12] : memref<32x2xf32, #tpu.memory_space<vmem>>, vector<32x2xf32>
    %c0_13 = arith.constant 0 : index
    %c0_14 = arith.constant 0 : index
    %7 = vector.load %arg8[%c0_13, %c0_14] : memref<1x2xf32, #tpu.memory_space<vmem>>, vector<1x2xf32>
    %cst = arith.constant dense<0.000000e+00> : vector<8x64xf32>
    %8 = tpu.matmul %0, %2, %cst {dimension_numbers = #tpu.dot_dimension_numbers<[1], [0], [0], [1], [0, 0, 1, 1], [], []>} : vector<8x32xf32>, vector<32x64xf32>, vector<8x64xf32> -> vector<8x64xf32>
    %9 = vector.broadcast %3 : vector<1x64xf32> to vector<8x64xf32>
    %10 = arith.addf %8, %9 : vector<8x64xf32>
    %11 = vector.extract_strided_slice %10 {offsets = [0, 0], sizes = [8, 32], strides = [1, 1]} : vector<8x64xf32> to vector<8x32xf32>
    %cst_15 = arith.constant dense<0.000000e+00> : vector<8xf32>
    %12 = vector.multi_reduction <add>, %11, %cst_15 [1] : vector<8x32xf32> to vector<8xf32>
    %13 = vector.shape_cast %12 : vector<8xf32> to vector<8x1xf32>
    %cst_16 = arith.constant 3.200000e+01 : f32
    %14 = vector.broadcast %cst_16 : f32 to vector<8x1xf32>
    %15 = arith.divf %13, %14 : vector<8x1xf32>
    %16 = vector.broadcast %15 : vector<8x1xf32> to vector<8x32xf32>
    %17 = arith.subf %11, %16 : vector<8x32xf32>
    %18 = arith.mulf %17, %17 : vector<8x32xf32>
    %cst_17 = arith.constant dense<0.000000e+00> : vector<8xf32>
    %19 = vector.multi_reduction <add>, %18, %cst_17 [1] : vector<8x32xf32> to vector<8xf32>
    %20 = vector.shape_cast %19 : vector<8xf32> to vector<8x1xf32>
    %cst_18 = arith.constant 3.200000e+01 : f32
    %21 = vector.broadcast %cst_18 : f32 to vector<8x1xf32>
    %22 = arith.divf %20, %21 : vector<8x1xf32>
    %23 = vector.broadcast %15 : vector<8x1xf32> to vector<8x32xf32>
    %24 = arith.subf %11, %23 : vector<8x32xf32>
    %cst_19 = arith.constant 9.99999974E-6 : f32
    %25 = vector.broadcast %cst_19 : f32 to vector<8x1xf32>
    %26 = arith.addf %22, %25 : vector<8x1xf32>
    %27 = math.rsqrt %26 : vector<8x1xf32>
    %28 = vector.broadcast %27 : vector<8x1xf32> to vector<8x32xf32>
    %29 = arith.mulf %24, %28 : vector<8x32xf32>
    %30 = vector.broadcast %4 : vector<1x32xf32> to vector<8x32xf32>
    %31 = arith.mulf %29, %30 : vector<8x32xf32>
    %32 = vector.broadcast %5 : vector<1x32xf32> to vector<8x32xf32>
    %33 = arith.addf %31, %32 : vector<8x32xf32>
    %34 = math.tanh %33 : vector<8x32xf32>
    %35 = vector.extract_strided_slice %10 {offsets = [0, 32], sizes = [8, 32], strides = [1, 1]} : vector<8x64xf32> to vector<8x32xf32>
    %cst_20 = arith.constant dense<0.000000e+00> : vector<8xf32>
    %36 = vector.multi_reduction <add>, %35, %cst_20 [1] : vector<8x32xf32> to vector<8xf32>
    %37 = vector.shape_cast %36 : vector<8xf32> to vector<8x1xf32>
    %cst_21 = arith.constant 3.200000e+01 : f32
    %38 = vector.broadcast %cst_21 : f32 to vector<8x1xf32>
    %39 = arith.divf %37, %38 : vector<8x1xf32>
    %40 = vector.broadcast %39 : vector<8x1xf32> to vector<8x32xf32>
    %41 = arith.subf %35, %40 : vector<8x32xf32>
    %42 = arith.mulf %41, %41 : vector<8x32xf32>
    %cst_22 = arith.constant dense<0.000000e+00> : vector<8xf32>
    %43 = vector.multi_reduction <add>, %42, %cst_22 [1] : vector<8x32xf32> to vector<8xf32>
    %44 = vector.shape_cast %43 : vector<8xf32> to vector<8x1xf32>
    %cst_23 = arith.constant 3.200000e+01 : f32
    %45 = vector.broadcast %cst_23 : f32 to vector<8x1xf32>
    %46 = arith.divf %44, %45 : vector<8x1xf32>
    %47 = vector.broadcast %39 : vector<8x1xf32> to vector<8x32xf32>
    %48 = arith.subf %35, %47 : vector<8x32xf32>
    %cst_24 = arith.constant 9.99999974E-6 : f32
    %49 = vector.broadcast %cst_24 : f32 to vector<8x1xf32>
    %50 = arith.addf %46, %49 : vector<8x1xf32>
    %51 = math.rsqrt %50 : vector<8x1xf32>
    %52 = vector.broadcast %51 : vector<8x1xf32> to vector<8x32xf32>
    %53 = arith.mulf %48, %52 : vector<8x32xf32>
    %54 = vector.broadcast %4 : vector<1x32xf32> to vector<8x32xf32>
    %55 = arith.mulf %53, %54 : vector<8x32xf32>
    %56 = vector.broadcast %5 : vector<1x32xf32> to vector<8x32xf32>
    %57 = arith.addf %55, %56 : vector<8x32xf32>
    %58 = math.tanh %57 : vector<8x32xf32>
    %cst_25 = arith.constant dense<0.000000e+00> : vector<8x2xf32>
    %59 = tpu.matmul %34, %6, %cst_25 {dimension_numbers = #tpu.dot_dimension_numbers<[1], [0], [0], [1], [0, 0, 1, 1], [], []>} : vector<8x32xf32>, vector<32x2xf32>, vector<8x2xf32> -> vector<8x2xf32>
    %60 = vector.broadcast %7 : vector<1x2xf32> to vector<8x2xf32>
    %61 = arith.addf %59, %60 : vector<8x2xf32>
    %cst_26 = arith.constant dense<0.000000e+00> : vector<8x2xf32>
    %62 = tpu.matmul %58, %6, %cst_26 {dimension_numbers = #tpu.dot_dimension_numbers<[1], [0], [0], [1], [0, 0, 1, 1], [], []>} : vector<8x32xf32>, vector<32x2xf32>, vector<8x2xf32> -> vector<8x2xf32>
    %63 = vector.broadcast %7 : vector<1x2xf32> to vector<8x2xf32>
    %64 = arith.addf %62, %63 : vector<8x2xf32>
    %65 = vector.extract_strided_slice %1 {offsets = [0, 1], sizes = [8, 1], strides = [1, 1]} : vector<8x2xf32> to vector<8x1xf32>
    %cst_27 = arith.constant 5.000000e-01 : f32
    %66 = vector.broadcast %cst_27 : f32 to vector<8x1xf32>
    %67 = arith.mulf %66, %65 : vector<8x1xf32>
    %68 = tpu.concatenate %34, %58 in 1 : vector<8x32xf32>, vector<8x32xf32> -> vector<8x64xf32>
    %cst_28 = arith.constant dense<0xFF800000> : vector<8xf32>
    %69 = vector.multi_reduction <maximumf>, %61, %cst_28 [1] : vector<8x2xf32> to vector<8xf32>
    %70 = vector.shape_cast %69 : vector<8xf32> to vector<8x1xf32>
    %71 = vector.broadcast %70 : vector<8x1xf32> to vector<8x2xf32>
    %72 = arith.subf %61, %71 : vector<8x2xf32>
    %73 = math.exp %72 : vector<8x2xf32>
    %cst_29 = arith.constant dense<0.000000e+00> : vector<8xf32>
    %74 = vector.multi_reduction <add>, %73, %cst_29 [1] : vector<8x2xf32> to vector<8xf32>
    %75 = vector.shape_cast %74 : vector<8xf32> to vector<8x1xf32>
    %76 = math.log %75 : vector<8x1xf32>
    %77 = arith.addf %76, %70 : vector<8x1xf32>
    %78 = vector.broadcast %77 : vector<8x1xf32> to vector<8x2xf32>
    %79 = arith.subf %61, %78 : vector<8x2xf32>
    %80 = vector.broadcast %67 : vector<8x1xf32> to vector<8x2xf32>
    %81 = arith.addf %80, %79 : vector<8x2xf32>
    %cst_30 = arith.constant dense<0xFF800000> : vector<8xf32>
    %82 = vector.multi_reduction <maximumf>, %64, %cst_30 [1] : vector<8x2xf32> to vector<8xf32>
    %83 = vector.shape_cast %82 : vector<8xf32> to vector<8x1xf32>
    %84 = vector.broadcast %83 : vector<8x1xf32> to vector<8x2xf32>
    %85 = arith.subf %64, %84 : vector<8x2xf32>
    %86 = math.exp %85 : vector<8x2xf32>
    %cst_31 = arith.constant dense<0.000000e+00> : vector<8xf32>
    %87 = vector.multi_reduction <add>, %86, %cst_31 [1] : vector<8x2xf32> to vector<8xf32>
    %88 = vector.shape_cast %87 : vector<8xf32> to vector<8x1xf32>
    %89 = math.log %88 : vector<8x1xf32>
    %90 = arith.addf %89, %83 : vector<8x1xf32>
    %91 = vector.broadcast %90 : vector<8x1xf32> to vector<8x2xf32>
    %92 = arith.subf %64, %91 : vector<8x2xf32>
    %93 = vector.broadcast %67 : vector<8x1xf32> to vector<8x2xf32>
    %94 = arith.addf %93, %92 : vector<8x2xf32>
    %95 = tpu.concatenate %81, %94 in 1 : vector<8x2xf32>, vector<8x2xf32> -> vector<8x4xf32>
    %c0_32 = arith.constant 0 : index
    %c0_33 = arith.constant 0 : index
    %96 = vector.load %arg9[%c0_32, %c0_33] : memref<8x64xf32, #tpu.memory_space<vmem>>, vector<8x64xf32>
    tpu.vector_store %arg9[%c0_32, %c0_33], %68 {strides = array<i32>} : memref<8x64xf32, #tpu.memory_space<vmem>>, vector<8x64xf32>,
    %c0_34 = arith.constant 0 : index
    %c0_35 = arith.constant 0 : index
    %97 = vector.load %arg10[%c0_34, %c0_35] : memref<8x4xf32, #tpu.memory_space<vmem>>, vector<8x4xf32>
    tpu.vector_store %arg10[%c0_34, %c0_35], %95 {strides = array<i32>} : memref<8x4xf32, #tpu.memory_space<vmem>>, vector<8x4xf32>,
    return
  }
  func.func @transform_0(%arg0: i32) -> (i32, i32) {
    %c0_i32 = arith.constant 0 : i32
    %c0_i32_0 = arith.constant 0 : i32
    return %arg0, %c0_i32 : i32, i32
  }
  func.func @transform_1(%arg0: i32) -> (i32, i32) {
    %c0_i32 = arith.constant 0 : i32
    %c0_i32_0 = arith.constant 0 : i32
    return %arg0, %c0_i32 : i32, i32
  }
  func.func @transform_2(%arg0: i32) -> (i32, i32) {
    %c0_i32 = arith.constant 0 : i32
    %c0_i32_0 = arith.constant 0 : i32
    %c0_i32_1 = arith.constant 0 : i32
    return %c0_i32, %c0_i32_0 : i32, i32
  }
  func.func @transform_3(%arg0: i32) -> (i32, i32) {
    %c0_i32 = arith.constant 0 : i32
    %c0_i32_0 = arith.constant 0 : i32
    %c0_i32_1 = arith.constant 0 : i32
    return %c0_i32, %c0_i32_0 : i32, i32
  }
  func.func @transform_4(%arg0: i32) -> (i32, i32) {
    %c0_i32 = arith.constant 0 : i32
    %c0_i32_0 = arith.constant 0 : i32
    %c0_i32_1 = arith.constant 0 : i32
    return %c0_i32, %c0_i32_0 : i32, i32
  }
  func.func @transform_5(%arg0: i32) -> (i32, i32) {
    %c0_i32 = arith.constant 0 : i32
    %c0_i32_0 = arith.constant 0 : i32
    %c0_i32_1 = arith.constant 0 : i32
    return %c0_i32, %c0_i32_0 : i32, i32
  }
  func.func @transform_6(%arg0: i32) -> (i32, i32) {
    %c0_i32 = arith.constant 0 : i32
    %c0_i32_0 = arith.constant 0 : i32
    %c0_i32_1 = arith.constant 0 : i32
    return %c0_i32, %c0_i32_0 : i32, i32
  }
  func.func @transform_7(%arg0: i32) -> (i32, i32) {
    %c0_i32 = arith.constant 0 : i32
    %c0_i32_0 = arith.constant 0 : i32
    %c0_i32_1 = arith.constant 0 : i32
    return %c0_i32, %c0_i32_0 : i32, i32
  }
  func.func @transform_8(%arg0: i32) -> (i32, i32) {
    %c0_i32 = arith.constant 0 : i32
    %c0_i32_0 = arith.constant 0 : i32
    return %arg0, %c0_i32 : i32, i32
  }
  func.func @transform_9(%arg0: i32) -> (i32, i32) {
    %c0_i32 = arith.constant 0 : i32
    %c0_i32_0 = arith.constant 0 : i32
    return %arg0, %c0_i32 : i32, i32
  }
}

module attributes {stable_mosaic.version = 11 : i64} {
  func.func @_output_kernel(%arg0: i32, %arg1: memref<30x32xf32, #tpu.memory_space<vmem>>, %arg2: memref<30x2xf32, #tpu.memory_space<vmem>>, %arg3: memref<32x128xf32, #tpu.memory_space<vmem>>, %arg4: memref<30x128xf32, #tpu.memory_space<vmem>>) attributes {dimension_semantics = [#tpu.dimension_semantics<parallel>], iteration_bounds = array<i64: 1>, scalar_prefetch = 0 : i64, scratch_operands = 0 : i64, tpu.core_type = #tpu.core_type<tc>, window_params = [{transform_indices = @transform_0, window_bounds = array<i64: 30, 32>}, {transform_indices = @transform_1, window_bounds = array<i64: 30, 2>}, {pipeline_mode = #tpu.pipeline_mode<synchronous>, transform_indices = @transform_2, window_bounds = array<i64: 32, 128>}, {transform_indices = @transform_3, window_bounds = array<i64: 30, 128>}]} {
    %c0 = arith.constant 0 : index
    %c0_0 = arith.constant 0 : index
    %0 = vector.load %arg1[%c0, %c0_0] : memref<30x32xf32, #tpu.memory_space<vmem>>, vector<30x32xf32>
    %c0_1 = arith.constant 0 : index
    %c0_2 = arith.constant 0 : index
    %1 = vector.load %arg3[%c0_1, %c0_2] : memref<32x128xf32, #tpu.memory_space<vmem>>, vector<32x128xf32>
    %cst = arith.constant dense<0.000000e+00> : vector<30x128xf32>
    %2 = tpu.matmul %0, %1, %cst {dimension_numbers = #tpu.dot_dimension_numbers<[1], [0], [0], [1], [0, 0, 1, 1], [], []>} : vector<30x32xf32>, vector<32x128xf32>, vector<30x128xf32> -> vector<30x128xf32>
    %3 = tpu.iota {dimensions = array<i32: 1>} : vector<30x128xi32>
    %c16_i32 = arith.constant 16 : i32
    %4 = vector.broadcast %c16_i32 : i32 to vector<30x128xi32>
    %5 = arith.cmpi slt, %3, %4 : vector<30x128xi32>
    %cst_3 = arith.constant -1.000000e+30 : f32
    %6 = vector.broadcast %cst_3 : f32 to vector<30x128xf32>
    %7 = arith.select %5, %2, %6 : vector<30x128xi1>, vector<30x128xf32>
    %cst_4 = arith.constant dense<0xFF800000> : vector<30xf32>
    %8 = vector.multi_reduction <maximumf>, %7, %cst_4 [1] : vector<30x128xf32> to vector<30xf32>
    %9 = vector.shape_cast %8 : vector<30xf32> to vector<30x1xf32>
    %10 = vector.broadcast %9 : vector<30x1xf32> to vector<30x128xf32>
    %11 = arith.subf %7, %10 : vector<30x128xf32>
    %12 = math.exp %11 : vector<30x128xf32>
    %cst_5 = arith.constant dense<0.000000e+00> : vector<30xf32>
    %13 = vector.multi_reduction <add>, %12, %cst_5 [1] : vector<30x128xf32> to vector<30xf32>
    %14 = vector.shape_cast %13 : vector<30xf32> to vector<30x1xf32>
    %15 = math.log %14 : vector<30x1xf32>
    %16 = arith.addf %15, %9 : vector<30x1xf32>
    %17 = vector.broadcast %16 : vector<30x1xf32> to vector<30x128xf32>
    %18 = arith.subf %7, %17 : vector<30x128xf32>
    %c0_6 = arith.constant 0 : index
    %c0_7 = arith.constant 0 : index
    %19 = vector.load %arg2[%c0_6, %c0_7] : memref<30x2xf32, #tpu.memory_space<vmem>>, vector<30x2xf32>
    %20 = vector.extract_strided_slice %19 {offsets = [0, 0], sizes = [30, 1], strides = [1, 1]} : vector<30x2xf32> to vector<30x1xf32>
    %21 = vector.broadcast %20 : vector<30x1xf32> to vector<30x128xf32>
    %22 = arith.addf %18, %21 : vector<30x128xf32>
    %c0_8 = arith.constant 0 : index
    %c0_9 = arith.constant 0 : index
    %23 = vector.load %arg4[%c0_8, %c0_9] : memref<30x128xf32, #tpu.memory_space<vmem>>, vector<30x128xf32>
    tpu.vector_store %arg4[%c0_8, %c0_9], %22 {strides = array<i32>} : memref<30x128xf32, #tpu.memory_space<vmem>>, vector<30x128xf32>,
    return
  }
  func.func @transform_0(%arg0: i32) -> (i32, i32) {
    %c0_i32 = arith.constant 0 : i32
    %c0_i32_0 = arith.constant 0 : i32
    return %arg0, %c0_i32 : i32, i32
  }
  func.func @transform_1(%arg0: i32) -> (i32, i32) {
    %c0_i32 = arith.constant 0 : i32
    %c0_i32_0 = arith.constant 0 : i32
    return %arg0, %c0_i32 : i32, i32
  }
  func.func @transform_2(%arg0: i32) -> (i32, i32) {
    %c0_i32 = arith.constant 0 : i32
    %c0_i32_0 = arith.constant 0 : i32
    %c0_i32_1 = arith.constant 0 : i32
    return %c0_i32, %c0_i32_0 : i32, i32
  }
  func.func @transform_3(%arg0: i32) -> (i32, i32) {
    %c0_i32 = arith.constant 0 : i32
    %c0_i32_0 = arith.constant 0 : i32
    return %arg0, %c0_i32 : i32, i32
  }
}

</mosaic_0001>

<bundles_post_ra>
// kernel: ctree_decoder_forward.6
= control target key start
LH: loop header
LB: loop body
LE: loop exit
PB: predicated region body
PF: predicated region fallthrough
CT: control target
= control target key end

     0   :  { %vm56_vm0 = vcmask 261120   ;;  %vm107_vm1 = vcmask 254976   ;;  %v325_v20 = vmov 32.0   ;;  %vm278_vm9 = vcmask 517120   ;;  %s475_s4 = inlined_call_operand.vmem [shape: f32[32,64], index: 4, kind: input, shape index: {}]   ;;  %s476_s3 = inlined_call_operand.vmem [shape: f32[32,64], index: 3, kind: input, shape index: {}]   ;;  %s477_s6 = inlined_call_operand.vmem [shape: f32[1,32], index: 6, kind: input, shape index: {}]   ;;  %s478_s1 = inlined_call_operand.vmem [shape: f32[2,32], index: 1, kind: input, shape index: {}]   ;;  %s479_s0 = inlined_call_operand.vmem [shape: f32[2,32], index: 0, kind: input, shape index: {}]   ;;  %s480_s7 = inlined_call_operand.vmem [shape: f32[1,32], index: 7, kind: input, shape index: {}]   ;;  %s481_s5 = inlined_call_operand.vmem [shape: f32[1,64], index: 5, kind: input, shape index: {}]   ;;  %s482_s8 = inlined_call_operand.vmem [shape: f32[32,2], index: 8, kind: input, shape index: {}]   ;;  %s483_s9 = inlined_call_operand.vmem [shape: f32[1,2], index: 9, kind: input, shape index: {}]   ;;  %s484_s10 = inlined_call_operand.vmem [shape: f32[2,64], index: 10, kind: output, shape index: {0}]   ;;  %s485_s2 = inlined_call_operand.vmem [shape: f32[2,2], index: 2, kind: input, shape index: {}]   ;;  %s486_s11 = inlined_call_operand.vmem [shape: f32[2,4], index: 11, kind: output, shape index: {1}]  }
   0x1   :  { %v47_v0 = vld [vmem:[%s475_s4 + $0x18] sm:$0xff]  ;;  %v46_v2 = vld [vmem:[%s475_s4 + $0x10] sm:$0xff]  ;;  %v45_v4 = vld [vmem:[%s475_s4 + $0x8] sm:$0xff]  ;;  %305 = vrcp.f32 %v325_v20  ;;  %vm238_vm10 = vcmask 9216   ;;  %vm276_vm11 = vcmask 15360   ;;  %vm280_vm12 = vcmask 25600  }
   0x2   :  { %v43_v1 = vld [vmem:[%s476_s3 + $0x18] sm:$0xff]  ;;  %72 = vmatpush.msra.mxu0 %v47_v0  ;;  %v42_v3 = vld [vmem:[%s476_s3 + $0x10] sm:$0xff]  ;;  %v41_v5 = vld [vmem:[%s476_s3 + $0x8] sm:$0xff] }
   0x3   :  { %95 = vmatpush.msra.mxu1 %v43_v1  ;;  %v409_v6 = vld [vmem:[%s477_s6] ss:$0 sm:$0xff]  ;;  %s323_s6 = smov 32   ;;  %v54_v43 = vld [vmem:[%s482_s8 + $0x18] sm:$0xff]  ;;  %v53_v44 = vld [vmem:[%s482_s8 + $0x10] sm:$0xff] }
   0x4   :  { %73 = vmatpush.msra.mxu0 %v46_v2  ;;  %v44_v7 = vld [vmem:[%s475_s4] sm:$0xff]  ;;  %176 = vrot.lane.b32.xlu2 %v409_v6, %s323_s6  ;;  %v52_v46 = vld [vmem:[%s482_s8 + $0x8] sm:$0xff] }
   0x5   :  { %96 = vmatpush.msra.mxu1 %v42_v3  ;;  %v40_v8 = vld [vmem:[%s476_s3] sm:$0xff]  ;;  %203 = vmatpush.msra.mxu2 %v54_v43 }
   0x6   :  { %74 = vmatpush.msra.mxu0 %v45_v4  ;;  %v38_v9 = vld [vmem:[%s478_s1] sm:$0x3]  ;;  %228 = vmatpush.msra.mxu3 %v54_v43 }
   0x7   :  { %97 = vmatpush.msra.mxu1 %v41_v5  ;;  %v37_v10 = vld [vmem:[%s479_s0] sm:$0x3]  ;;  %s324_s0 = smov 96   ;;  %v306_v21 = vpop.eup %305  ;;  %204 = vmatpush.msra.mxu2 %v53_v44 }
   0x8   :  { %75 = vmatpush.msra.mxu0 %v44_v7  ;;  %v429_v11 = vld [vmem:[%s480_s7] ss:$0 sm:$0xff]  ;;  %v112_v22 = vmul.f32 32.0, %v306_v21  ;;  %vm116_vm2 = vweird.f32 %v306_v21  ;;  %229 = vmatpush.msra.mxu3 %v53_v44 }
   0x9   :  { %98 = vmatpush.msra.mxu1 %v40_v8  ;;  %290 = vmatmul.msk.f32.vlgmr.msra.gmra.mxu0 %vm56_vm0, %v38_v9  ;;  %v303_v12 = vld [vmem:[%s481_s5] ss:$0 sm:$0xff] }
   0xa   :  { %291 = vmatmul.msk.f32.vlgmr.msra.gmra.mxu1 %vm56_vm0, %v37_v10  ;;  %v113_v23 = vsub.f32 1.0, %v112_v22  ;;  %205 = vmatpush.msra.mxu2 %v52_v46  ;;  %v51_v48 = vld [vmem:[%s482_s8] sm:$0xff] }
   0xb   :  { %230 = vmatpush.msra.mxu3 %v52_v46 }
   0xc   :  { %180 = vrot.lane.b32.xlu2 %v429_v11, %s323_s6  ;;  %v114_v24 = vmul.f32 %v306_v21, %v113_v23  ;;  %206 = vmatpush.msra.mxu2 %v51_v48 }
   0xd   :  { %231 = vmatpush.msra.mxu3 %v51_v48 }
   0xe   :  { %v115_v25 = vadd.f32 %v306_v21, %v114_v24 }
  0x10   :  { %v117_v26 = vsel %vm116_vm2, %v306_v21, %v115_v25 }
  0x5e   :  { %v177_v31 = vpop.permute.xlu2 %176 }
  0x66   :  { %v181_v32 = vpop.permute.xlu2 %180 }
  0x86   :  { %v77_v13 = vpop.f32.mrf.mxu0 }
  0x87   :  { %v100_v14 = vpop.f32.mrf.mxu1 }
  0x88   :  { %v101_v15 = vadd.f32 %v100_v14, %v77_v13  ;;  %v39_v14 = vld [vmem:[%s485_s2] sm:$0x3]  ;;  %s327_s2 = smov 2  }
  0x8a   :  { %v106_v16 = vadd.f32 %v303_v12, %v101_v15  ;;  %v326_v15 = vmov 1  }
  0x8b   :  { %299 = vset.pattern.permute.xlu1 %v326_v15  ;;  %300 = vset.pattern.permute.xlu0 %v326_v15 }
  0x8c   :  { %147 = vrot.lane.b32.xlu0 %v106_v16, %s324_s0  ;;  %v108_v17 = vsel %vm107_vm1, %v106_v16, 0.0 }
  0x8d   :  { %109 = vadd.xlane.f32.xlu2 %v108_v17 }
  0xfe   :  { %v148_v18 = vpop.permute.xlu0 %147 }
  0xff   :  { %v150_v19 = vsel %vm107_vm1, %v148_v18, 0.0 }
 0x100   :  { %151 = vadd.xlane.f32.xlu0 %v150_v19  ;;  %v110_v33 = vpop.xlane.xlu2 %109 }
 0x101   :  { %v118_v34 = vmul.f32 %v117_v26, %v110_v33 }
 0x103   :  { %v119_v36 = vsub.f32 %v106_v16, %v118_v34 }
 0x105   :  { %v120_v38 = vmul.f32 %v119_v36, %v119_v36 }
 0x107   :  { %v121_v39 = vsel %vm107_vm1, %v120_v38, 0.0 }
 0x173   :  { %v152_v27 = vpop.xlane.xlu0 %151 }
 0x174   :  { %v153_v28 = vmul.f32 %v152_v27, %v117_v26 }
 0x176   :  { %v154_v29 = vsub.f32 %v106_v16, %v153_v28  ;;  %v236_v16 = vmul.f32 0.5, %v39_v14 }
 0x178   :  { %v155_v30 = vmul.f32 %v154_v29, %v154_v29 }
 0x17a   :  { %157 = vrot.lane.b32.xlu1 %v155_v30, %s324_s0 }
 0x1ec   :  { %v158_v35 = vpop.permute.xlu1 %157 }
 0x1ed   :  { %v160_v37 = vsel %vm107_vm1, %v158_v35, 0.0 }
 0x1ee   :  { %161 = vadd.xlane.f32.xlu1 %v160_v37 }
 0x1f6   :  { %122 = vadd.xlane.f32.xlu1 %v121_v39 }
 0x261   :  { %v162_v40 = vpop.xlane.xlu1 %161 }
 0x262   :  { %v163_v41 = vmul.f32 %v162_v40, %v117_v26 }
 0x264   :  { %v164_v42 = vadd.f32 1e-05, %v163_v41 }
 0x266   :  { %307 = vrsqrt.f32 %v164_v42  ;;  %vm171_vm4 = vweird.f32 %v164_v42 }
 0x269   :  { %v123_v45 = vpop.xlane.xlu1 %122 }
 0x26a   :  { %v124_v47 = vmul.f32 %v123_v45, %v117_v26 }
 0x26c   :  { %v308_v49 = vpop.eup %307  ;;  %v125_v50 = vadd.f32 1e-05, %v124_v47 }
 0x26d   :  { %v166_v51 = vmul.f32 %v308_v49, %v164_v42  ;;  %vm172_vm3 = vweird.f32 %v308_v49 }
 0x26e   :  { %309 = vrsqrt.f32 %v125_v50  ;;  %vm173_vm5 = vmor %vm171_vm4, %vm172_vm3  ;;  %vm132_vm7 = vweird.f32 %v125_v50 }
 0x26f   :  { %v167_v52 = vmul.f32 %v308_v49, %v166_v51 }
 0x271   :  { %v168_v53 = vmul.f32 0.5, %v167_v52 }
 0x273   :  { %v169_v54 = vsub.f32 1.5, %v168_v53 }
 0x274   :  { %v310_v55 = vpop.eup %309 }
 0x275   :  { %v170_v56 = vmul.f32 %v308_v49, %v169_v54  ;;  %v127_v57 = vmul.f32 %v310_v55, %v125_v50  ;;  %vm133_vm6 = vweird.f32 %v310_v55 }
 0x276   :  { %vm134_vm8 = vmor %vm132_vm7, %vm133_vm6 }
 0x277   :  { %v174_v58 = vsel %vm173_vm5, %v308_v49, %v170_v56  ;;  %v128_v59 = vmul.f32 %v310_v55, %v127_v57 }
 0x278   :  { %v175_v60 = vmul.f32 %v174_v58, %v154_v29 }
 0x279   :  { %v129_v61 = vmul.f32 0.5, %v128_v59 }
 0x27a   :  { %v179_v62 = vmul.f32 %v177_v31, %v175_v60 }
 0x27b   :  { %v130_v63 = vsub.f32 1.5, %v129_v61 }
 0x27c   :  { %v183_v0 = vadd.f32 %v181_v32, %v179_v62 }
 0x27d   :  { %v131_v1 = vmul.f32 %v310_v55, %v130_v63 }
 0x27e   :  { %311 = vtanh.f32 %v183_v0 }
 0x27f   :  { %v135_v2 = vsel %vm134_vm8, %v310_v55, %v131_v1 }
 0x280   :  { %v136_v3 = vmul.f32 %v135_v2, %v119_v36 }
 0x282   :  { %v140_v4 = vmul.f32 %v409_v6, %v136_v3  ;;  %v304_v6 = vld [vmem:[%s483_s9] ss:$0 sm:$0xff] }
 0x284   :  { %v312_v5 = vpop.eup %311  ;;  %v144_v7 = vadd.f32 %v429_v11, %v140_v4 }
 0x285   :  { %212 = vrot.lane.b32.xlu0 %v312_v5, %s324_s0 }
 0x286   :  { %313 = vtanh.f32 %v144_v7 }
 0x28c   :  { %v314_v8 = vpop.eup %313 }
 0x28d   :  { %v237_v9 = vsel %vm56_vm0, %v314_v8, %v312_v5  ;;  %292 = vmatmul.msk.f32.vlgmr.msra.gmra.mxu2 %vm56_vm0, %v314_v8 }
 0x28e   :  { %279 = vst.msk [vmem:[%s484_s10] sm:$0x3] %vm278_vm9, %v237_v9 }
 0x2f7   :  { %v213_v10 = vpop.permute.xlu0 %212 }
 0x2f8   :  { %293 = vmatmul.msk.f32.vlgmr.msra.gmra.mxu3 %vm56_vm0, %v213_v10 }
 0x310   :  { %v208_v11 = vpop.f32.mrf.mxu2 }
 0x311   :  { %v209_v12 = vadd.f32 %v304_v6, %v208_v11 }
 0x313   :  { %v239_v13 = vsel %vm238_vm10, %v209_v12, -inf }
 0x314   :  { %240 = vmax.xlane.f32.xlu1 %v239_v13 }
 0x32d   :  { %254 = vperm.xlu1 %299, %v236_v16  }
 0x37b   :  { %v233_v17 = vpop.f32.mrf.mxu3 }
 0x37c   :  { %v234_v18 = vadd.f32 %v304_v6, %v233_v17 }
 0x37e   :  { %v258_v19 = vsel %vm238_vm10, %v234_v18, -inf }
 0x37f   :  { %259 = vmax.xlane.f32.xlu2 %v258_v19 }
 0x387   :  { %v241_v20 = vpop.xlane.xlu1 %240 }
 0x388   :  { %v242_v21 = vsub.f32 %v209_v12, %v241_v20 }
 0x38a   :  { %v243_v22 = vmul.f32 1.442695, %v242_v21 }
 0x38c   :  { %315 = vpow2.f32 %v243_v22 }
 0x392   :  { %v316_v23 = vpop.eup %315 }
 0x393   :  { %v245_v24 = vsel %vm238_vm10, %v316_v23, 0.0 }
 0x394   :  { %246 = vadd.xlane.f32.xlu0 %v245_v24 }
 0x39f   :  { %v255_v35 = vpop.permute.xlu1 %254 }
 0x3f2   :  { %v260_v25 = vpop.xlane.xlu2 %259 }
 0x3f3   :  { %v261_v26 = vsub.f32 %v234_v18, %v260_v25 }
 0x3f5   :  { %v262_v27 = vmul.f32 1.442695, %v261_v26 }
 0x3f7   :  { %317 = vpow2.f32 %v262_v27 }
 0x3fd   :  { %v318_v28 = vpop.eup %317 }
 0x3fe   :  { %v264_v29 = vsel %vm238_vm10, %v318_v28, 0.0 }
 0x3ff   :  { %265 = vadd.xlane.f32.xlu2 %v264_v29 }
 0x407   :  { %v247_v37 = vpop.xlane.xlu0 %246 }
 0x472   :  { %v266_v30 = vpop.xlane.xlu2 %265 }
 0x473   :  { %319 = vlog2.f32 %v266_v30 }
 0x474   :  { %321 = vlog2.f32 %v247_v37 }
 0x479   :  { %v320_v31 = vpop.eup %319 }
 0x47a   :  { %v268_v32 = vmul.f32 0.6931472, %v320_v31  ;;  %v322_v38 = vpop.eup %321 }
 0x47b   :  { %v249_v39 = vmul.f32 0.6931472, %v322_v38 }
 0x47c   :  { %v269_v33 = vadd.f32 %v268_v32, %v260_v25 }
 0x47d   :  { %v250_v40 = vadd.f32 %v249_v39, %v241_v20 }
 0x47e   :  { %v270_v34 = vsub.f32 %v234_v18, %v269_v33 }
 0x47f   :  { %v251_v41 = vsub.f32 %v209_v12, %v250_v40 }
 0x480   :  { %v271_v36 = vadd.f32 %v270_v34, %v255_v35 }
 0x481   :  { %v257_v42 = vadd.f32 %v255_v35, %v251_v41 }
 0x482   :  { %273 = vrot.lane.b32.xlu2 %v271_v36, %s327_s2 }
 0x4dc   :  { %v274_v43 = vpop.permute.xlu2 %273 }
 0x4dd   :  { %v277_v44 = vsel %vm276_vm11, %v257_v42, %v274_v43 }
 0x4de   :  { %281 = vst.msk [vmem:[%s486_s11] sm:$0x3] %vm280_vm12, %v277_v44 }

// kernel: ctree_decoder_forward.5
= control target key start
LH: loop header
LB: loop body
LE: loop exit
PB: predicated region body
PF: predicated region fallthrough
CT: control target
= control target key end

     0   :  { %vm40_vm0 = vcmask 261120   ;;  %vm66_vm1 = vcmask 254976   ;;  %v203_v9 = vmov 32.0   ;;  %vm162_vm6 = vcmask 9216   ;;  %s320_s1 = inlined_call_operand.vmem [shape: f32[32,32], index: 1, kind: input, shape index: {}]   ;;  %s321_s2 = inlined_call_operand.vmem [shape: f32[1,32], index: 2, kind: input, shape index: {}]   ;;  %s322_s0 = inlined_call_operand.vmem [shape: f32[2,32], index: 0, kind: input, shape index: {}]   ;;  %s323_s3 = inlined_call_operand.vmem [shape: f32[1,32], index: 3, kind: input, shape index: {}]   ;;  %s324_s4 = inlined_call_operand.vmem [shape: f32[1,32], index: 4, kind: input, shape index: {}]   ;;  %s325_s5 = inlined_call_operand.vmem [shape: f32[32,2], index: 5, kind: input, shape index: {}]   ;;  %s326_s6 = inlined_call_operand.vmem [shape: f32[32,2], index: 6, kind: input, shape index: {}]   ;;  %s327_s7 = inlined_call_operand.vmem [shape: f32[1,2], index: 7, kind: input, shape index: {}]   ;;  %s328_s8 = inlined_call_operand.vmem [shape: f32[2,32], index: 8, kind: output, shape index: {0}]   ;;  %s329_s9 = inlined_call_operand.vmem [shape: f32[2,2], index: 9, kind: output, shape index: {1}]  }
   0x1   :  { %v35_v0 = vld [vmem:[%s320_s1 + $0x18] sm:$0xff]  ;;  %v34_v1 = vld [vmem:[%s320_s1 + $0x10] sm:$0xff]  ;;  %v33_v2 = vld [vmem:[%s320_s1 + $0x8] sm:$0xff]  ;;  %193 = vrcp.f32 %v203_v9 }
   0x2   :  { %56 = vmatpush.msra.mxu0 %v35_v0  ;;  %v32_v3 = vld [vmem:[%s320_s1] sm:$0xff]  ;;  %v109_v21 = vld [vmem:[%s325_s5 + $0x18] sm:$0xff]  ;;  %v108_v22 = vld [vmem:[%s325_s5 + $0x10] sm:$0xff] }
   0x3   :  { %v31_v4 = vld [vmem:[%s322_s0] sm:$0x3]  ;;  %149 = vmatpush.msra.mxu2 %v109_v21  ;;  %v107_v24 = vld [vmem:[%s325_s5 + $0x8] sm:$0xff]  ;;  %v113_v26 = vld [vmem:[%s326_s6 + $0x18] sm:$0xff] }
   0x4   :  { %57 = vmatpush.msra.mxu0 %v34_v1  ;;  %v189_v5 = vld [vmem:[%s321_s2] ss:$0 sm:$0xff]  ;;  %126 = vmatpush.msra.mxu1 %v113_v26  ;;  %v112_v29 = vld [vmem:[%s326_s6 + $0x10] sm:$0xff]  ;;  %v111_v30 = vld [vmem:[%s326_s6 + $0x8] sm:$0xff] }
   0x5   :  { %150 = vmatpush.msra.mxu2 %v108_v22  ;;  %v106_v27 = vld [vmem:[%s325_s5] sm:$0xff] }
   0x6   :  { %58 = vmatpush.msra.mxu0 %v33_v2  ;;  %127 = vmatpush.msra.mxu1 %v112_v29  ;;  %v110_v31 = vld [vmem:[%s326_s6] sm:$0xff] }
   0x7   :  { %v194_v10 = vpop.eup %193  ;;  %151 = vmatpush.msra.mxu2 %v107_v24  ;;  %v190_v38 = vld [vmem:[%s323_s3] ss:$0 sm:$0xff] }
   0x8   :  { %59 = vmatpush.msra.mxu0 %v32_v3  ;;  %v71_v11 = vmul.f32 32.0, %v194_v10  ;;  %vm75_vm2 = vweird.f32 %v194_v10  ;;  %128 = vmatpush.msra.mxu1 %v111_v30  ;;  %v191_v40 = vld [vmem:[%s324_s4] ss:$0 sm:$0xff] }
   0x9   :  { %185 = vmatmul.msk.f32.vlgmr.msra.gmra.mxu0 %vm40_vm0, %v31_v4  ;;  %152 = vmatpush.msra.mxu2 %v106_v27  ;;  %v192_v46 = vld [vmem:[%s327_s7] ss:$0 sm:$0xff] }
   0xa   :  { %v72_v12 = vsub.f32 1.0, %v71_v11  ;;  %129 = vmatpush.msra.mxu1 %v110_v31 }
   0xb   :  { %186 = vmatmul.msk.f32.vlgmr.msra.gmra.mxu1 %vm40_vm0, %v31_v4 }
   0xc   :  { %v73_v13 = vmul.f32 %v194_v10, %v72_v12 }
   0xe   :  { %v74_v14 = vadd.f32 %v194_v10, %v73_v13 }
  0x10   :  { %v76_v15 = vsel %vm75_vm2, %v194_v10, %v74_v14 }
  0x86   :  { %v61_v6 = vpop.f32.mrf.mxu0 }
  0x87   :  { %v62_v7 = vadd.f32 %v189_v5, %v61_v6 }
  0x88   :  { %v131_v45 = vpop.f32.mrf.mxu1 }
  0x89   :  { %v67_v8 = vsel %vm66_vm1, %v62_v7, 0.0 }
  0x8a   :  { %68 = vadd.xlane.f32.xlu0 %v67_v8 }
  0xfd   :  { %v69_v16 = vpop.xlane.xlu0 %68 }
  0xfe   :  { %v77_v17 = vmul.f32 %v76_v15, %v69_v16 }
 0x100   :  { %v78_v18 = vsub.f32 %v62_v7, %v77_v17 }
 0x102   :  { %v79_v19 = vmul.f32 %v78_v18, %v78_v18 }
 0x104   :  { %v80_v20 = vsel %vm66_vm1, %v79_v19, 0.0 }
 0x105   :  { %81 = vadd.xlane.f32.xlu0 %v80_v20 }
 0x178   :  { %v82_v23 = vpop.xlane.xlu0 %81 }
 0x179   :  { %v83_v25 = vmul.f32 %v82_v23, %v76_v15 }
 0x17b   :  { %v84_v28 = vadd.f32 1e-05, %v83_v25 }
 0x17d   :  { %195 = vrsqrt.f32 %v84_v28  ;;  %vm91_vm4 = vweird.f32 %v84_v28 }
 0x183   :  { %v196_v32 = vpop.eup %195 }
 0x184   :  { %v86_v33 = vmul.f32 %v196_v32, %v84_v28  ;;  %vm92_vm3 = vweird.f32 %v196_v32 }
 0x185   :  { %vm93_vm5 = vmor %vm91_vm4, %vm92_vm3 }
 0x186   :  { %v87_v34 = vmul.f32 %v196_v32, %v86_v33 }
 0x188   :  { %v88_v35 = vmul.f32 0.5, %v87_v34 }
 0x18a   :  { %v89_v36 = vsub.f32 1.5, %v88_v35 }
 0x18c   :  { %v90_v37 = vmul.f32 %v196_v32, %v89_v36 }
 0x18e   :  { %v94_v39 = vsel %vm93_vm5, %v196_v32, %v90_v37 }
 0x18f   :  { %v95_v41 = vmul.f32 %v94_v39, %v78_v18 }
 0x191   :  { %v99_v42 = vmul.f32 %v190_v38, %v95_v41 }
 0x193   :  { %v103_v43 = vadd.f32 %v191_v40, %v99_v42 }
 0x195   :  { %197 = vtanh.f32 %v103_v43 }
 0x19b   :  { %v198_v44 = vpop.eup %197 }
 0x19c   :  { %105 = vst.msk [vmem:[%s328_s8] sm:$0x3] %vm66_vm1, %v198_v44  ;;  %187 = vmatmul.msk.f32.vlgmr.msra.gmra.mxu2 %vm40_vm0, %v198_v44 }
 0x21f   :  { %v154_v47 = vpop.f32.mrf.mxu2 }
 0x220   :  { %v155_v48 = vadd.f32 %v154_v47, %v131_v45 }
 0x222   :  { %v161_v49 = vadd.f32 %v192_v46, %v155_v48 }
 0x224   :  { %v163_v50 = vsel %vm162_vm6, %v161_v49, -inf }
 0x225   :  { %164 = vmax.xlane.f32.xlu1 %v163_v50 }
 0x298   :  { %v165_v51 = vpop.xlane.xlu1 %164 }
 0x299   :  { %v166_v52 = vsub.f32 %v161_v49, %v165_v51 }
 0x29b   :  { %v167_v53 = vmul.f32 1.442695, %v166_v52 }
 0x29d   :  { %199 = vpow2.f32 %v167_v53 }
 0x2a3   :  { %v200_v54 = vpop.eup %199 }
 0x2a4   :  { %v169_v55 = vsel %vm162_vm6, %v200_v54, 0.0 }
 0x2a5   :  { %170 = vadd.xlane.f32.xlu1 %v169_v55 }
 0x318   :  { %v171_v56 = vpop.xlane.xlu1 %170 }
 0x319   :  { %201 = vlog2.f32 %v171_v56 }
 0x31f   :  { %v202_v57 = vpop.eup %201 }
 0x320   :  { %v173_v58 = vmul.f32 0.6931472, %v202_v57 }
 0x322   :  { %v174_v59 = vadd.f32 %v173_v58, %v165_v51 }
 0x324   :  { %v175_v60 = vsub.f32 %v161_v49, %v174_v59 }
 0x326   :  { %176 = vst.msk [vmem:[%s329_s9] sm:$0x3] %vm162_vm6, %v175_v60 }

// kernel: ctree_decoder_forward.8
= control target key start
LH: loop header
LB: loop body
LE: loop exit
PB: predicated region body
PF: predicated region fallthrough
CT: control target
= control target key end

     0   :  { %s285_s19 = smov 32   ;;  %vm48_vm0 = vcmask 261120   ;;  %s286_s24 = smov 96   ;;  %v287_v13 = vmov 32.0   ;;  %vm241_vm8 = vcmask 523264   ;;  %vm202_vm9 = vcmask 15360   ;;  %s412_s2 = inlined_call_operand.vmem [shape: f32[32,64], index: 2, kind: input, shape index: {}]   ;;  %s413_s4 = inlined_call_operand.vmem [shape: f32[1,32], index: 4, kind: input, shape index: {}]   ;;  %s414_s5 = inlined_call_operand.vmem [shape: f32[1,32], index: 5, kind: input, shape index: {}]   ;;  %s415_s0 = inlined_call_operand.vmem [shape: f32[8,32], index: 0, kind: input, shape index: {}]   ;;  %s416_s3 = inlined_call_operand.vmem [shape: f32[1,64], index: 3, kind: input, shape index: {}]   ;;  %s417_s6 = inlined_call_operand.vmem [shape: f32[32,2], index: 6, kind: input, shape index: {}]   ;;  %s418_s7 = inlined_call_operand.vmem [shape: f32[1,2], index: 7, kind: input, shape index: {}]   ;;  %s419_s8 = inlined_call_operand.vmem [shape: f32[8,64], index: 8, kind: output, shape index: {0}]   ;;  %s420_s1 = inlined_call_operand.vmem [shape: f32[8,2], index: 1, kind: input, shape index: {}]   ;;  %s421_s9 = inlined_call_operand.vmem [shape: f32[8,4], index: 9, kind: output, shape index: {1}]  }
   0x1   :  { %v36_v0 = vld [vmem:[%s412_s2 + $0x18] sm:$0xff]  ;;  %v35_v1 = vld [vmem:[%s412_s2 + $0x10] sm:$0xff]  ;;  %v34_v2 = vld [vmem:[%s412_s2 + $0x8] sm:$0xff]  ;;  %267 = vrcp.f32 %v287_v13  ;;  %vm243_vm10 = vcmask 31744  }
   0x2   :  { %64 = vmatpush.msra.mxu0 %v36_v0  ;;  %v352_v3 = vld [vmem:[%s413_s4] ss:$0 sm:$0xff]  ;;  %v43_v36 = vld [vmem:[%s417_s6 + $0x18] sm:$0xff]  ;;  %v42_v37 = vld [vmem:[%s417_s6 + $0x10] sm:$0xff] }
   0x3   :  { %v33_v4 = vld [vmem:[%s412_s2] sm:$0xff]  ;;  %140 = vrot.lane.b32.xlu2 %v352_v3, %s285_s19  ;;  %167 = vmatpush.msra.mxu1 %v43_v36  ;;  %v41_v39 = vld [vmem:[%s417_s6 + $0x8] sm:$0xff] }
   0x4   :  { %65 = vmatpush.msra.mxu0 %v35_v1  ;;  %v31_v5 = vld [vmem:[%s415_s0] sm:$0xff]  ;;  %192 = vmatpush.msra.mxu2 %v43_v36 }
   0x5   :  { %v365_v6 = vld [vmem:[%s414_s5] ss:$0 sm:$0xff]  ;;  %168 = vmatpush.msra.mxu1 %v42_v37 }
   0x6   :  { %66 = vmatpush.msra.mxu0 %v34_v2  ;;  %v265_v7 = vld [vmem:[%s416_s3] ss:$0 sm:$0xff]  ;;  %193 = vmatpush.msra.mxu2 %v42_v37 }
   0x7   :  { %v268_v14 = vpop.eup %267  ;;  %169 = vmatpush.msra.mxu1 %v41_v39  ;;  %v40_v41 = vld [vmem:[%s417_s6] sm:$0xff] }
   0x8   :  { %67 = vmatpush.msra.mxu0 %v33_v4  ;;  %v76_v15 = vmul.f32 32.0, %v268_v14  ;;  %vm80_vm1 = vweird.f32 %v268_v14  ;;  %194 = vmatpush.msra.mxu2 %v41_v39 }
   0x9   :  { %253 = vmatmul.msk.f32.vlgmr.msra.gmra.mxu0 %vm48_vm0, %v31_v5  ;;  %170 = vmatpush.msra.mxu1 %v40_v41 }
   0xa   :  { %v77_v16 = vsub.f32 1.0, %v76_v15  ;;  %195 = vmatpush.msra.mxu2 %v40_v41 }
   0xb   :  { %144 = vrot.lane.b32.xlu2 %v365_v6, %s285_s19 }
   0xc   :  { %v78_v17 = vmul.f32 %v268_v14, %v77_v16 }
   0xe   :  { %v79_v18 = vadd.f32 %v268_v14, %v78_v17 }
  0x10   :  { %v81_v19 = vsel %vm80_vm1, %v268_v14, %v79_v18 }
  0x5d   :  { %v141_v24 = vpop.permute.xlu2 %140 }
  0x65   :  { %v145_v25 = vpop.permute.xlu2 %144 }
  0x86   :  { %v69_v8 = vpop.f32.mrf.mxu0 }
  0x87   :  { %v70_v9 = vadd.f32 %v265_v7, %v69_v8  ;;  %v32_v7 = vld [vmem:[%s420_s1] sm:$0xff]  ;;  %v288_v8 = vmov 1   ;;  %s289_s1 = smov 2  }
  0x88   :  { %261 = vset.pattern.permute.xlu1 %v288_v8  ;;  %262 = vset.pattern.permute.xlu0 %v288_v8 }
  0x89   :  { %111 = vrot.lane.b32.xlu0 %v70_v9, %s286_s24  ;;  %v72_v10 = vsel %vm48_vm0, %v70_v9, 0.0 }
  0x8a   :  { %73 = vadd.xlane.f32.xlu2 %v72_v10 }
  0xfb   :  { %v112_v11 = vpop.permute.xlu0 %111 }
  0xfc   :  { %v114_v12 = vsel %vm48_vm0, %v112_v11, 0.0 }
  0xfd   :  { %115 = vadd.xlane.f32.xlu0 %v114_v12  ;;  %v74_v26 = vpop.xlane.xlu2 %73 }
  0xfe   :  { %v82_v27 = vmul.f32 %v81_v19, %v74_v26 }
 0x100   :  { %v83_v29 = vsub.f32 %v70_v9, %v82_v27 }
 0x102   :  { %v84_v31 = vmul.f32 %v83_v29, %v83_v29 }
 0x104   :  { %v85_v32 = vsel %vm48_vm0, %v84_v31, 0.0 }
 0x170   :  { %v116_v20 = vpop.xlane.xlu0 %115 }
 0x171   :  { %v117_v21 = vmul.f32 %v116_v20, %v81_v19 }
 0x173   :  { %v118_v22 = vsub.f32 %v70_v9, %v117_v21  ;;  %v200_v9 = vmul.f32 0.5, %v32_v7 }
 0x175   :  { %v119_v23 = vmul.f32 %v118_v22, %v118_v22 }
 0x177   :  { %121 = vrot.lane.b32.xlu1 %v119_v23, %s286_s24 }
 0x1e9   :  { %v122_v28 = vpop.permute.xlu1 %121 }
 0x1ea   :  { %v124_v30 = vsel %vm48_vm0, %v122_v28, 0.0 }
 0x1eb   :  { %125 = vadd.xlane.f32.xlu1 %v124_v30 }
 0x1f3   :  { %86 = vadd.xlane.f32.xlu1 %v85_v32 }
 0x25e   :  { %v126_v33 = vpop.xlane.xlu1 %125 }
 0x25f   :  { %v127_v34 = vmul.f32 %v126_v33, %v81_v19 }
 0x261   :  { %v128_v35 = vadd.f32 1e-05, %v127_v34 }
 0x263   :  { %269 = vrsqrt.f32 %v128_v35  ;;  %vm135_vm3 = vweird.f32 %v128_v35 }
 0x266   :  { %v87_v38 = vpop.xlane.xlu1 %86 }
 0x267   :  { %v88_v40 = vmul.f32 %v87_v38, %v81_v19 }
 0x269   :  { %v270_v42 = vpop.eup %269  ;;  %v89_v43 = vadd.f32 1e-05, %v88_v40 }
 0x26a   :  { %v130_v44 = vmul.f32 %v270_v42, %v128_v35  ;;  %vm136_vm2 = vweird.f32 %v270_v42 }
 0x26b   :  { %271 = vrsqrt.f32 %v89_v43  ;;  %vm137_vm4 = vmor %vm135_vm3, %vm136_vm2  ;;  %vm96_vm6 = vweird.f32 %v89_v43 }
 0x26c   :  { %v131_v45 = vmul.f32 %v270_v42, %v130_v44 }
 0x26e   :  { %v132_v46 = vmul.f32 0.5, %v131_v45 }
 0x270   :  { %v133_v47 = vsub.f32 1.5, %v132_v46 }
 0x271   :  { %v272_v48 = vpop.eup %271 }
 0x272   :  { %v134_v49 = vmul.f32 %v270_v42, %v133_v47  ;;  %v91_v50 = vmul.f32 %v272_v48, %v89_v43  ;;  %vm97_vm5 = vweird.f32 %v272_v48 }
 0x273   :  { %vm98_vm7 = vmor %vm96_vm6, %vm97_vm5 }
 0x274   :  { %v138_v51 = vsel %vm137_vm4, %v270_v42, %v134_v49  ;;  %v92_v52 = vmul.f32 %v272_v48, %v91_v50 }
 0x275   :  { %v139_v53 = vmul.f32 %v138_v51, %v118_v22 }
 0x276   :  { %v93_v54 = vmul.f32 0.5, %v92_v52 }
 0x277   :  { %v143_v55 = vmul.f32 %v141_v24, %v139_v53 }
 0x278   :  { %v94_v56 = vsub.f32 1.5, %v93_v54 }
 0x279   :  { %v147_v57 = vadd.f32 %v145_v25, %v143_v55 }
 0x27a   :  { %v95_v58 = vmul.f32 %v272_v48, %v94_v56 }
 0x27b   :  { %273 = vtanh.f32 %v147_v57 }
 0x27c   :  { %v99_v59 = vsel %vm98_vm7, %v272_v48, %v95_v58 }
 0x27d   :  { %v100_v60 = vmul.f32 %v99_v59, %v83_v29 }
 0x27f   :  { %v104_v61 = vmul.f32 %v352_v3, %v100_v60  ;;  %v266_v3 = vld [vmem:[%s418_s7] ss:$0 sm:$0xff] }
 0x281   :  { %v274_v62 = vpop.eup %273  ;;  %v108_v63 = vadd.f32 %v365_v6, %v104_v61 }
 0x282   :  { %176 = vrot.lane.b32.xlu0 %v274_v62, %s286_s24 }
 0x283   :  { %275 = vtanh.f32 %v108_v63 }
 0x289   :  { %v276_v0 = vpop.eup %275 }
 0x28a   :  { %v201_v1 = vsel %vm48_vm0, %v276_v0, %v274_v62  ;;  %254 = vmatmul.msk.f32.vlgmr.msra.gmra.mxu1 %vm48_vm0, %v276_v0 }
 0x28b   :  { %242 = vst.msk [vmem:[%s419_s8] sm:$0xff] %vm241_vm8, %v201_v1 }
 0x2f4   :  { %v177_v2 = vpop.permute.xlu0 %176 }
 0x2f5   :  { %255 = vmatmul.msk.f32.vlgmr.msra.gmra.mxu2 %vm48_vm0, %v177_v2 }
 0x307   :  { %v172_v4 = vpop.f32.mrf.mxu1 }
 0x308   :  { %v173_v5 = vadd.f32 %v266_v3, %v172_v4 }
 0x30a   :  { %v203_v6 = vsel %vm202_vm9, %v173_v5, -inf }
 0x30b   :  { %204 = vmax.xlane.f32.xlu1 %v203_v6 }
 0x324   :  { %218 = vperm.xlu1 %261, %v200_v9  }
 0x378   :  { %v197_v10 = vpop.f32.mrf.mxu2 }
 0x379   :  { %v198_v11 = vadd.f32 %v266_v3, %v197_v10 }
 0x37b   :  { %v222_v12 = vsel %vm202_vm9, %v198_v11, -inf }
 0x37c   :  { %223 = vmax.xlane.f32.xlu2 %v222_v12 }
 0x37e   :  { %v205_v13 = vpop.xlane.xlu1 %204 }
 0x37f   :  { %v206_v14 = vsub.f32 %v173_v5, %v205_v13 }
 0x381   :  { %v207_v15 = vmul.f32 1.442695, %v206_v14 }
 0x383   :  { %277 = vpow2.f32 %v207_v15 }
 0x389   :  { %v278_v16 = vpop.eup %277 }
 0x38a   :  { %v209_v17 = vsel %vm202_vm9, %v278_v16, 0.0 }
 0x38b   :  { %210 = vadd.xlane.f32.xlu0 %v209_v17 }
 0x396   :  { %v219_v28 = vpop.permute.xlu1 %218 }
 0x3ef   :  { %v224_v18 = vpop.xlane.xlu2 %223 }
 0x3f0   :  { %v225_v19 = vsub.f32 %v198_v11, %v224_v18 }
 0x3f2   :  { %v226_v20 = vmul.f32 1.442695, %v225_v19 }
 0x3f4   :  { %279 = vpow2.f32 %v226_v20 }
 0x3fa   :  { %v280_v21 = vpop.eup %279 }
 0x3fb   :  { %v228_v22 = vsel %vm202_vm9, %v280_v21, 0.0 }
 0x3fc   :  { %229 = vadd.xlane.f32.xlu2 %v228_v22 }
 0x3fe   :  { %v211_v30 = vpop.xlane.xlu0 %210 }
 0x46f   :  { %v230_v23 = vpop.xlane.xlu2 %229 }
 0x470   :  { %281 = vlog2.f32 %v230_v23 }
 0x471   :  { %283 = vlog2.f32 %v211_v30 }
 0x476   :  { %v282_v24 = vpop.eup %281 }
 0x477   :  { %v232_v25 = vmul.f32 0.6931472, %v282_v24  ;;  %v284_v31 = vpop.eup %283 }
 0x478   :  { %v213_v32 = vmul.f32 0.6931472, %v284_v31 }
 0x479   :  { %v233_v26 = vadd.f32 %v232_v25, %v224_v18 }
 0x47a   :  { %v214_v33 = vadd.f32 %v213_v32, %v205_v13 }
 0x47b   :  { %v234_v27 = vsub.f32 %v198_v11, %v233_v26 }
 0x47c   :  { %v215_v34 = vsub.f32 %v173_v5, %v214_v33 }
 0x47d   :  { %v235_v29 = vadd.f32 %v234_v27, %v219_v28 }
 0x47e   :  { %v221_v35 = vadd.f32 %v219_v28, %v215_v34 }
 0x47f   :  { %237 = vrot.lane.b32.xlu2 %v235_v29, %s289_s1 }
 0x4d9   :  { %v238_v36 = vpop.permute.xlu2 %237 }
 0x4da   :  { %v240_v37 = vsel %vm202_vm9, %v221_v35, %v238_v36 }
 0x4db   :  { %244 = vst.msk [vmem:[%s421_s9] sm:$0xff] %vm243_vm10, %v240_v37 }

// kernel: ctree_decoder_forward.7
= control target key start
LH: loop header
LB: loop body
LE: loop exit
PB: predicated region body
PF: predicated region fallthrough
CT: control target
= control target key end

     0   :  { %s287_s19 = smov 32   ;;  %vm48_vm0 = vcmask 261120   ;;  %vm72_vm1 = vcmask 257024   ;;  %s288_s24 = smov 96   ;;  %v289_v13 = vmov 32.0   ;;  %vm243_vm9 = vcmask 519168   ;;  %s413_s2 = inlined_call_operand.vmem [shape: f32[32,64], index: 2, kind: input, shape index: {}]   ;;  %s414_s4 = inlined_call_operand.vmem [shape: f32[1,32], index: 4, kind: input, shape index: {}]   ;;  %s415_s5 = inlined_call_operand.vmem [shape: f32[1,32], index: 5, kind: input, shape index: {}]   ;;  %s416_s0 = inlined_call_operand.vmem [shape: f32[4,32], index: 0, kind: input, shape index: {}]   ;;  %s417_s3 = inlined_call_operand.vmem [shape: f32[1,64], index: 3, kind: input, shape index: {}]   ;;  %s418_s6 = inlined_call_operand.vmem [shape: f32[32,2], index: 6, kind: input, shape index: {}]   ;;  %s419_s7 = inlined_call_operand.vmem [shape: f32[1,2], index: 7, kind: input, shape index: {}]   ;;  %s420_s8 = inlined_call_operand.vmem [shape: f32[4,64], index: 8, kind: output, shape index: {0}]   ;;  %s421_s1 = inlined_call_operand.vmem [shape: f32[4,2], index: 1, kind: input, shape index: {}]   ;;  %s422_s9 = inlined_call_operand.vmem [shape: f32[4,4], index: 9, kind: output, shape index: {1}]  }
   0x1   :  { %v36_v0 = vld [vmem:[%s413_s2 + $0x18] sm:$0xff]  ;;  %v35_v1 = vld [vmem:[%s413_s2 + $0x10] sm:$0xff]  ;;  %v34_v2 = vld [vmem:[%s413_s2 + $0x8] sm:$0xff]  ;;  %269 = vrcp.f32 %v289_v13  ;;  %vm203_vm10 = vcmask 11264   ;;  %vm241_vm11 = vcmask 15360   ;;  %vm245_vm12 = vcmask 27648  }
   0x2   :  { %64 = vmatpush.msra.mxu0 %v36_v0  ;;  %v354_v3 = vld [vmem:[%s414_s4] ss:$0 sm:$0xff]  ;;  %v43_v36 = vld [vmem:[%s418_s6 + $0x18] sm:$0xff]  ;;  %v42_v37 = vld [vmem:[%s418_s6 + $0x10] sm:$0xff] }
   0x3   :  { %v33_v4 = vld [vmem:[%s413_s2] sm:$0xff]  ;;  %141 = vrot.lane.b32.xlu2 %v354_v3, %s287_s19  ;;  %168 = vmatpush.msra.mxu1 %v43_v36  ;;  %v41_v39 = vld [vmem:[%s418_s6 + $0x8] sm:$0xff] }
   0x4   :  { %65 = vmatpush.msra.mxu0 %v35_v1  ;;  %v31_v5 = vld [vmem:[%s416_s0] sm:$0xf]  ;;  %193 = vmatpush.msra.mxu2 %v43_v36 }
   0x5   :  { %v367_v6 = vld [vmem:[%s415_s5] ss:$0 sm:$0xff]  ;;  %169 = vmatpush.msra.mxu1 %v42_v37 }
   0x6   :  { %66 = vmatpush.msra.mxu0 %v34_v2  ;;  %v267_v7 = vld [vmem:[%s417_s3] ss:$0 sm:$0xff]  ;;  %194 = vmatpush.msra.mxu2 %v42_v37 }
   0x7   :  { %v270_v14 = vpop.eup %269  ;;  %170 = vmatpush.msra.mxu1 %v41_v39  ;;  %v40_v41 = vld [vmem:[%s418_s6] sm:$0xff] }
   0x8   :  { %67 = vmatpush.msra.mxu0 %v33_v4  ;;  %v77_v15 = vmul.f32 32.0, %v270_v14  ;;  %vm81_vm2 = vweird.f32 %v270_v14  ;;  %195 = vmatpush.msra.mxu2 %v41_v39 }
   0x9   :  { %255 = vmatmul.msk.f32.vlgmr.msra.gmra.mxu0 %vm48_vm0, %v31_v5  ;;  %171 = vmatpush.msra.mxu1 %v40_v41 }
   0xa   :  { %v78_v16 = vsub.f32 1.0, %v77_v15  ;;  %196 = vmatpush.msra.mxu2 %v40_v41 }
   0xb   :  { %145 = vrot.lane.b32.xlu2 %v367_v6, %s287_s19 }
   0xc   :  { %v79_v17 = vmul.f32 %v270_v14, %v78_v16 }
   0xe   :  { %v80_v18 = vadd.f32 %v270_v14, %v79_v17 }
  0x10   :  { %v82_v19 = vsel %vm81_vm2, %v270_v14, %v80_v18 }
  0x5d   :  { %v142_v24 = vpop.permute.xlu2 %141 }
  0x65   :  { %v146_v25 = vpop.permute.xlu2 %145 }
  0x86   :  { %v69_v8 = vpop.f32.mrf.mxu0 }
  0x87   :  { %v70_v9 = vadd.f32 %v267_v7, %v69_v8  ;;  %v32_v7 = vld [vmem:[%s421_s1] sm:$0xf]  ;;  %v290_v8 = vmov 1   ;;  %s291_s1 = smov 2  }
  0x88   :  { %263 = vset.pattern.permute.xlu1 %v290_v8  ;;  %264 = vset.pattern.permute.xlu0 %v290_v8 }
  0x89   :  { %112 = vrot.lane.b32.xlu0 %v70_v9, %s288_s24  ;;  %v73_v10 = vsel %vm72_vm1, %v70_v9, 0.0 }
  0x8a   :  { %74 = vadd.xlane.f32.xlu2 %v73_v10 }
  0xfb   :  { %v113_v11 = vpop.permute.xlu0 %112 }
  0xfc   :  { %v115_v12 = vsel %vm72_vm1, %v113_v11, 0.0 }
  0xfd   :  { %116 = vadd.xlane.f32.xlu0 %v115_v12  ;;  %v75_v26 = vpop.xlane.xlu2 %74 }
  0xfe   :  { %v83_v27 = vmul.f32 %v82_v19, %v75_v26 }
 0x100   :  { %v84_v29 = vsub.f32 %v70_v9, %v83_v27 }
 0x102   :  { %v85_v31 = vmul.f32 %v84_v29, %v84_v29 }
 0x104   :  { %v86_v32 = vsel %vm72_vm1, %v85_v31, 0.0 }
 0x170   :  { %v117_v20 = vpop.xlane.xlu0 %116 }
 0x171   :  { %v118_v21 = vmul.f32 %v117_v20, %v82_v19 }
 0x173   :  { %v119_v22 = vsub.f32 %v70_v9, %v118_v21  ;;  %v201_v9 = vmul.f32 0.5, %v32_v7 }
 0x175   :  { %v120_v23 = vmul.f32 %v119_v22, %v119_v22 }
 0x177   :  { %122 = vrot.lane.b32.xlu1 %v120_v23, %s288_s24 }
 0x1e9   :  { %v123_v28 = vpop.permute.xlu1 %122 }
 0x1ea   :  { %v125_v30 = vsel %vm72_vm1, %v123_v28, 0.0 }
 0x1eb   :  { %126 = vadd.xlane.f32.xlu1 %v125_v30 }
 0x1f3   :  { %87 = vadd.xlane.f32.xlu1 %v86_v32 }
 0x25e   :  { %v127_v33 = vpop.xlane.xlu1 %126 }
 0x25f   :  { %v128_v34 = vmul.f32 %v127_v33, %v82_v19 }
 0x261   :  { %v129_v35 = vadd.f32 1e-05, %v128_v34 }
 0x263   :  { %271 = vrsqrt.f32 %v129_v35  ;;  %vm136_vm4 = vweird.f32 %v129_v35 }
 0x266   :  { %v88_v38 = vpop.xlane.xlu1 %87 }
 0x267   :  { %v89_v40 = vmul.f32 %v88_v38, %v82_v19 }
 0x269   :  { %v272_v42 = vpop.eup %271  ;;  %v90_v43 = vadd.f32 1e-05, %v89_v40 }
 0x26a   :  { %v131_v44 = vmul.f32 %v272_v42, %v129_v35  ;;  %vm137_vm3 = vweird.f32 %v272_v42 }
 0x26b   :  { %273 = vrsqrt.f32 %v90_v43  ;;  %vm138_vm5 = vmor %vm136_vm4, %vm137_vm3  ;;  %vm97_vm7 = vweird.f32 %v90_v43 }
 0x26c   :  { %v132_v45 = vmul.f32 %v272_v42, %v131_v44 }
 0x26e   :  { %v133_v46 = vmul.f32 0.5, %v132_v45 }
 0x270   :  { %v134_v47 = vsub.f32 1.5, %v133_v46 }
 0x271   :  { %v274_v48 = vpop.eup %273 }
 0x272   :  { %v135_v49 = vmul.f32 %v272_v42, %v134_v47  ;;  %v92_v50 = vmul.f32 %v274_v48, %v90_v43  ;;  %vm98_vm6 = vweird.f32 %v274_v48 }
 0x273   :  { %vm99_vm8 = vmor %vm97_vm7, %vm98_vm6 }
 0x274   :  { %v139_v51 = vsel %vm138_vm5, %v272_v42, %v135_v49  ;;  %v93_v52 = vmul.f32 %v274_v48, %v92_v50 }
 0x275   :  { %v140_v53 = vmul.f32 %v139_v51, %v119_v22 }
 0x276   :  { %v94_v54 = vmul.f32 0.5, %v93_v52 }
 0x277   :  { %v144_v55 = vmul.f32 %v142_v24, %v140_v53 }
 0x278   :  { %v95_v56 = vsub.f32 1.5, %v94_v54 }
 0x279   :  { %v148_v57 = vadd.f32 %v146_v25, %v144_v55 }
 0x27a   :  { %v96_v58 = vmul.f32 %v274_v48, %v95_v56 }
 0x27b   :  { %275 = vtanh.f32 %v148_v57 }
 0x27c   :  { %v100_v59 = vsel %vm99_vm8, %v274_v48, %v96_v58 }
 0x27d   :  { %v101_v60 = vmul.f32 %v100_v59, %v84_v29 }
 0x27f   :  { %v105_v61 = vmul.f32 %v354_v3, %v101_v60  ;;  %v268_v3 = vld [vmem:[%s419_s7] ss:$0 sm:$0xff] }
 0x281   :  { %v276_v62 = vpop.eup %275  ;;  %v109_v63 = vadd.f32 %v367_v6, %v105_v61 }
 0x282   :  { %177 = vrot.lane.b32.xlu0 %v276_v62, %s288_s24 }
 0x283   :  { %277 = vtanh.f32 %v109_v63 }
 0x289   :  { %v278_v0 = vpop.eup %277 }
 0x28a   :  { %v202_v1 = vsel %vm48_vm0, %v278_v0, %v276_v62  ;;  %256 = vmatmul.msk.f32.vlgmr.msra.gmra.mxu1 %vm48_vm0, %v278_v0 }
 0x28b   :  { %244 = vst.msk [vmem:[%s420_s8] sm:$0xf] %vm243_vm9, %v202_v1 }
 0x2f4   :  { %v178_v2 = vpop.permute.xlu0 %177 }
 0x2f5   :  { %257 = vmatmul.msk.f32.vlgmr.msra.gmra.mxu2 %vm48_vm0, %v178_v2 }
 0x307   :  { %v173_v4 = vpop.f32.mrf.mxu1 }
 0x308   :  { %v174_v5 = vadd.f32 %v268_v3, %v173_v4 }
 0x30a   :  { %v204_v6 = vsel %vm203_vm10, %v174_v5, -inf }
 0x30b   :  { %205 = vmax.xlane.f32.xlu1 %v204_v6 }
 0x324   :  { %219 = vperm.xlu1 %263, %v201_v9  }
 0x378   :  { %v198_v10 = vpop.f32.mrf.mxu2 }
 0x379   :  { %v199_v11 = vadd.f32 %v268_v3, %v198_v10 }
 0x37b   :  { %v223_v12 = vsel %vm203_vm10, %v199_v11, -inf }
 0x37c   :  { %224 = vmax.xlane.f32.xlu2 %v223_v12 }
 0x37e   :  { %v206_v13 = vpop.xlane.xlu1 %205 }
 0x37f   :  { %v207_v14 = vsub.f32 %v174_v5, %v206_v13 }
 0x381   :  { %v208_v15 = vmul.f32 1.442695, %v207_v14 }
 0x383   :  { %279 = vpow2.f32 %v208_v15 }
 0x389   :  { %v280_v16 = vpop.eup %279 }
 0x38a   :  { %v210_v17 = vsel %vm203_vm10, %v280_v16, 0.0 }
 0x38b   :  { %211 = vadd.xlane.f32.xlu0 %v210_v17 }
 0x396   :  { %v220_v28 = vpop.permute.xlu1 %219 }
 0x3ef   :  { %v225_v18 = vpop.xlane.xlu2 %224 }
 0x3f0   :  { %v226_v19 = vsub.f32 %v199_v11, %v225_v18 }
 0x3f2   :  { %v227_v20 = vmul.f32 1.442695, %v226_v19 }
 0x3f4   :  { %281 = vpow2.f32 %v227_v20 }
 0x3fa   :  { %v282_v21 = vpop.eup %281 }
 0x3fb   :  { %v229_v22 = vsel %vm203_vm10, %v282_v21, 0.0 }
 0x3fc   :  { %230 = vadd.xlane.f32.xlu2 %v229_v22 }
 0x3fe   :  { %v212_v30 = vpop.xlane.xlu0 %211 }
 0x46f   :  { %v231_v23 = vpop.xlane.xlu2 %230 }
 0x470   :  { %283 = vlog2.f32 %v231_v23 }
 0x471   :  { %285 = vlog2.f32 %v212_v30 }
 0x476   :  { %v284_v24 = vpop.eup %283 }
 0x477   :  { %v233_v25 = vmul.f32 0.6931472, %v284_v24  ;;  %v286_v31 = vpop.eup %285 }
 0x478   :  { %v214_v32 = vmul.f32 0.6931472, %v286_v31 }
 0x479   :  { %v234_v26 = vadd.f32 %v233_v25, %v225_v18 }
 0x47a   :  { %v215_v33 = vadd.f32 %v214_v32, %v206_v13 }
 0x47b   :  { %v235_v27 = vsub.f32 %v199_v11, %v234_v26 }
 0x47c   :  { %v216_v34 = vsub.f32 %v174_v5, %v215_v33 }
 0x47d   :  { %v236_v29 = vadd.f32 %v235_v27, %v220_v28 }
 0x47e   :  { %v222_v35 = vadd.f32 %v220_v28, %v216_v34 }
 0x47f   :  { %238 = vrot.lane.b32.xlu2 %v236_v29, %s291_s1 }
 0x4d9   :  { %v239_v36 = vpop.permute.xlu2 %238 }
 0x4da   :  { %v242_v37 = vsel %vm241_vm11, %v222_v35, %v239_v36 }
 0x4db   :  { %246 = vst.msk [vmem:[%s422_s9] sm:$0xf] %vm245_vm12, %v242_v37 }

// kernel: ctree_decoder_forward.9
= control target key start
LH: loop header
LB: loop body
LE: loop exit
PB: predicated region body
PF: predicated region fallthrough
CT: control target
= control target key end

     0   :  { %vm22_vm0 = vcmask 261120   ;;  %v190_v9 = vmov 0   ;;  %v64_v10 = vlaneseq  ;;  %vm77_vm2 = vcmask 1045504   ;;  %s276_s2 = inlined_call_operand.vmem [shape: f32[32,128], index: 2, kind: input, shape index: {}]   ;;  %s277_s0 = inlined_call_operand.vmem [shape: f32[30,32], index: 0, kind: input, shape index: {}]   ;;  %s278_s1 = inlined_call_operand.vmem [shape: f32[30,2], index: 1, kind: input, shape index: {}]   ;;  %s279_s3 = inlined_call_operand.vmem [shape: f32[30,128], index: 3, kind: output, shape index: {}]  }
   0x1   :  { %v21_v0 = vld [vmem:[%s276_s2 + $0x18] sm:$0xff]  ;;  %v20_v1 = vld [vmem:[%s276_s2 + $0x10] sm:$0xff]  ;;  %v19_v2 = vld [vmem:[%s276_s2 + $0x8] sm:$0xff]  ;;  %171 = vset.pattern.permute.xlu2 %v190_v9  ;;  %173 = vset.pattern.permute.xlu1 %v190_v9 }
   0x2   :  { %158 = vmatpush.msra.mxu1 %v21_v0  ;;  %160 = vmatpush.msra.mxu3 %v21_v0  ;;  %v18_v3 = vld [vmem:[%s276_s2] sm:$0xff]  ;;  %v15_v4 = vld [vmem:[%s277_s0 + $0x8] sm:$0xff]  ;;  %v17_v5 = vld [vmem:[%s277_s0 + $0x18] sm:$0x3f]  ;;  %v65_v11 = vand.u32 127, %v64_v10 }
   0x3   :  { %159 = vmatpush.msra.mxu2 %v21_v0  ;;  %47 = vmatpush.msra.mxu0 %v21_v0  ;;  %v16_v6 = vld [vmem:[%s277_s0 + $0x10] sm:$0xff]  ;;  %v14_v7 = vld [vmem:[%s277_s0] sm:$0xff]  ;;  %v119_v38 = vld [vmem:[%s278_s1 + $0x8] sm:$0xff] }
   0x4   :  { %161 = vmatpush.msra.mxu1 %v20_v1  ;;  %163 = vmatpush.msra.mxu3 %v20_v1  ;;  %v118_v8 = vld [vmem:[%s278_s1] sm:$0xff]  ;;  %vm66_vm1 = vcmp.lt.s32.totalorder %v65_v11, 16  ;;  %v120_v39 = vld [vmem:[%s278_s1 + $0x10] sm:$0xff]  ;;  %v121_v40 = vld [vmem:[%s278_s1 + $0x18] sm:$0x3f] }
   0x5   :  { %162 = vmatpush.msra.mxu2 %v20_v1  ;;  %48 = vmatpush.msra.mxu0 %v20_v1 }
   0x6   :  { %164 = vmatpush.msra.mxu1 %v19_v2  ;;  %166 = vmatpush.msra.mxu3 %v19_v2 }
   0x7   :  { %165 = vmatpush.msra.mxu2 %v19_v2  ;;  %49 = vmatpush.msra.mxu0 %v19_v2 }
   0x8   :  { %167 = vmatpush.msra.mxu1 %v18_v3  ;;  %169 = vmatpush.msra.mxu3 %v18_v3 }
   0x9   :  { %155 = vmatmul.msk.f32.vlgmr.msra.gmra.mxu1 %vm22_vm0, %v15_v4  ;;  %157 = vmatmul.msk.f32.vlgmr.msra.gmra.mxu3 %vm22_vm0, %v17_v5 }
   0xa   :  { %168 = vmatpush.msra.mxu2 %v18_v3  ;;  %50 = vmatpush.msra.mxu0 %v18_v3 }
   0xb   :  { %156 = vmatmul.msk.f32.vlgmr.msra.gmra.mxu2 %vm22_vm0, %v16_v6  ;;  %154 = vmatmul.msk.f32.vlgmr.msra.gmra.mxu0 %vm22_vm0, %v14_v7 }
   0xc   :  { %124 = vperm.xlu2 %171, %v118_v8   ;;  %172 = vset.pattern.permute.xlu0 %v190_v9 }
  0x66   :  { %v125_v41 = vpop.permute.xlu2 %124 }
  0x86   :  { %v55_v12 = vpop.f32.mrf.mxu1 }
  0x87   :  { %v238_v13 = vsel %vm66_vm1, %v55_v12, -1e+30 }
  0x88   :  { %73 = vmax.xlane.f32.xlu1 %v238_v13  ;;  %v52_v19 = vpop.f32.mrf.mxu0 }
  0x89   :  { %v67_v20 = vsel %vm66_vm1, %v52_v19, -1e+30 }
  0x8c   :  { %v61_v14 = vpop.f32.mrf.mxu3 }
  0x8d   :  { %v241_v15 = vsel %vm66_vm1, %v61_v14, -1e+30 }
  0x8e   :  { %v58_v16 = vpop.f32.mrf.mxu2  ;;  %v78_v17 = vsel %vm77_vm2, %v241_v15, -inf }
  0x8f   :  { %v245_v18 = vsel %vm66_vm1, %v58_v16, -1e+30  ;;  %79 = vmax.xlane.f32.xlu0 %v78_v17 }
  0x90   :  { %75 = vmax.xlane.f32.xlu1 %v245_v18 }
  0x97   :  { %71 = vmax.xlane.f32.xlu0 %v67_v20 }
  0xfb   :  { %v74_v21 = vpop.xlane.xlu1 %73 }
  0xfc   :  { %v82_v34 = vsub.f32 %v238_v13, %v74_v21 }
  0xfe   :  { %v87_v35 = vmul.f32 1.442695, %v82_v34 }
 0x102   :  { %v80_v22 = vpop.xlane.xlu0 %79 }
 0x103   :  { %v84_v23 = vsub.f32 %v241_v15, %v80_v22  ;;  %v76_v24 = vpop.xlane.xlu1 %75 }
 0x104   :  { %v83_v25 = vsub.f32 %v245_v18, %v76_v24 }
 0x105   :  { %v91_v26 = vmul.f32 1.442695, %v84_v23 }
 0x106   :  { %v89_v27 = vmul.f32 1.442695, %v83_v25 }
 0x107   :  { %174 = vpow2.f32 %v91_v26 }
 0x108   :  { %176 = vpow2.f32 %v89_v27 }
 0x10a   :  { %v72_v28 = vpop.xlane.xlu0 %71 }
 0x10b   :  { %v81_v29 = vsub.f32 %v67_v20, %v72_v28 }
 0x10d   :  { %v175_v30 = vpop.eup %174  ;;  %v85_v31 = vmul.f32 1.442695, %v81_v29 }
 0x10e   :  { %v177_v32 = vpop.eup %176  ;;  %v99_v33 = vsel %vm77_vm2, %v175_v30, 0.0 }
 0x10f   :  { %178 = vpow2.f32 %v85_v31  ;;  %100 = vadd.xlane.f32.xlu1 %v99_v33  ;;  %97 = vadd.xlane.f32.xlu0 %v177_v32 }
 0x110   :  { %180 = vpow2.f32 %v87_v35 }
 0x115   :  { %v179_v36 = vpop.eup %178 }
 0x116   :  { %93 = vadd.xlane.f32.xlu2 %v179_v36  ;;  %v181_v37 = vpop.eup %180 }
 0x11e   :  { %95 = vadd.xlane.f32.xlu2 %v181_v37 }
 0x123   :  { %129 = vperm.xlu0 %172, %v119_v38  }
 0x128   :  { %134 = vperm.xlu1 %173, %v120_v39  }
 0x136   :  { %139 = vperm.xlu2 %171, %v121_v40  }
 0x182   :  { %v101_v42 = vpop.xlane.xlu1 %100  ;;  %v98_v43 = vpop.xlane.xlu0 %97 }
 0x183   :  { %182 = vlog2.f32 %v101_v42 }
 0x184   :  { %184 = vlog2.f32 %v98_v43 }
 0x189   :  { %v94_v44 = vpop.xlane.xlu2 %93  ;;  %v183_v45 = vpop.eup %182 }
 0x18a   :  { %186 = vlog2.f32 %v94_v44  ;;  %v185_v46 = vpop.eup %184  ;;  %v109_v48 = vmul.f32 0.6931472, %v183_v45 }
 0x18b   :  { %v107_v49 = vmul.f32 0.6931472, %v185_v46 }
 0x18c   :  { %v113_v53 = vadd.f32 %v109_v48, %v80_v22 }
 0x18d   :  { %v112_v54 = vadd.f32 %v107_v49, %v76_v24 }
 0x18e   :  { %v117_v58 = vsub.f32 %v241_v15, %v113_v53 }
 0x18f   :  { %v116_v61 = vsub.f32 %v245_v18, %v112_v54 }
 0x190   :  { %v187_v47 = vpop.eup %186 }
 0x191   :  { %v103_v50 = vmul.f32 0.6931472, %v187_v47  ;;  %v96_v51 = vpop.xlane.xlu2 %95 }
 0x192   :  { %188 = vlog2.f32 %v96_v51 }
 0x193   :  { %v110_v52 = vadd.f32 %v103_v50, %v72_v28 }
 0x195   :  { %v114_v55 = vsub.f32 %v67_v20, %v110_v52  ;;  %v130_v2 = vpop.permute.xlu0 %129 }
 0x197   :  { %v142_v56 = vadd.f32 %v125_v41, %v114_v55 }
 0x198   :  { %v189_v57 = vpop.eup %188 }
 0x199   :  { %v105_v59 = vmul.f32 0.6931472, %v189_v57  ;;  %146 = vst [vmem:[%s279_s3] sm:$0xff] %v142_v56  ;;  %v140_v60 = vpop.permute.xlu2 %139 }
 0x19a   :  { %v145_v62 = vadd.f32 %v140_v60, %v117_v58  ;;  %v135_v63 = vpop.permute.xlu1 %134 }
 0x19b   :  { %v111_v0 = vadd.f32 %v105_v59, %v74_v21  ;;  %v144_v1 = vadd.f32 %v135_v63, %v116_v61 }
 0x19c   :  { %149 = vst [vmem:[%s279_s3 + $0x18] sm:$0x3f] %v145_v62 }
 0x19d   :  { %148 = vst [vmem:[%s279_s3 + $0x10] sm:$0xff] %v144_v1  ;;  %v115_v3 = vsub.f32 %v238_v13, %v111_v0 }
 0x19f   :  { %v143_v4 = vadd.f32 %v130_v2, %v115_v3 }
 0x1a1   :  { %147 = vst [vmem:[%s279_s3 + $0x8] sm:$0xff] %v143_v4 }

</bundles_post_ra>
